<compile_context>
chip_gen: v6e
topology: v6e:2x2x1
jax: 0.10.0
libtpu: 0.0.40
codegen_flags: <defaults>
</compile_context>

<pallas_src>
import functools
import math

import jax
import jax.numpy as jnp
from jax.experimental import pallas as pl
from jax.experimental.pallas import tpu as pltpu

_GN_EPS = 1e-5
_HALO = 8          # halo block sublane rows; must cover ceil(K/stride) - 1 extra rows


def _round_up(x, m):
    return ((x + m - 1) // m) * m


def _gelu(x, approximate):
    if approximate:
        # tanh-form GELU: transcendental runs on the EUP (separate VLIW slot).
        c = 0.7978845608028654  # sqrt(2/pi)
        return 0.5 * x * (1.0 + jnp.tanh(c * (x + 0.044715 * x * x * x)))
    return 0.5 * x * (1.0 + jax.lax.erf(x * 0.7071067811865476))


# ---------------------------------------------------------------------------
# Pallas kernels
# ---------------------------------------------------------------------------
def _conv_bias_gelu_kernel(x_ref, xh_ref, w_ref, b_ref, o_ref, *,
                           t_tile, groups, approximate_gelu):
    # x_ref:  (1, t_tile, S*C_in)  current deinterleaved tile
    # xh_ref: (1, _HALO,  S*C_in)  halo rows (start of the next tile)
    # w_ref:  (NQ, S*C_in, C_out)  tap-group weights
    # b_ref:  (1, C_out) f32       o_ref: (1, t_tile, C_out)
    xc = x_ref[0]
    xh = xh_ref[0]
    win = jnp.concatenate([xc, xh], axis=0)                       # (t_tile + _HALO, S*C_in)
    c_out = o_ref.shape[2]
    acc = jnp.zeros((t_tile, c_out), jnp.float32)
    for q, cols in groups:                                        # static unroll, <= ceil(K/S) matmuls
        lhs = win[q:q + t_tile, :cols].astype(w_ref.dtype)
        rhs = w_ref[q][:cols, :]
        acc = acc + jnp.dot(lhs, rhs, preferred_element_type=jnp.float32)
    y = acc + b_ref[...]
    o_ref[0] = _gelu(y, approximate_gelu).astype(o_ref.dtype)


def _gn_conv_stats_kernel(x_ref, xh_ref, w_ref, o_ref, stats_ref, *,
                          t_tile, groups, t_valid):
    # GroupNorm layer, pass 1: conv (no bias - cancelled by the per-channel mean) and
    # per-channel sum / sum-of-squares over the valid rows only (padded rows masked).
    j = pl.program_id(1)
    xc = x_ref[0]
    xh = xh_ref[0]
    win = jnp.concatenate([xc, xh], axis=0)
    c_out = o_ref.shape[2]
    acc = jnp.zeros((t_tile, c_out), jnp.float32)
    for q, cols in groups:
        lhs = win[q:q + t_tile, :cols].astype(w_ref.dtype)
        rhs = w_ref[q][:cols, :]
        acc = acc + jnp.dot(lhs, rhs, preferred_element_type=jnp.float32)
    o_ref[0] = acc.astype(o_ref.dtype)

    row = j * t_tile + jax.lax.broadcasted_iota(jnp.int32, (t_tile, 1), 0)
    msk = (row < t_valid).astype(jnp.float32)
    am = acc * msk
    s0 = jnp.sum(am, axis=0, keepdims=True)                        # (1, C_out)
    s1 = jnp.sum(am * am, axis=0, keepdims=True)                   # (1, C_out)
    upd = jnp.concatenate([s0, s1], axis=0)[None]                  # (1, 2, C_out)

    @pl.when(j == 0)
    def _():
        stats_ref[...] = jnp.zeros(stats_ref.shape, stats_ref.dtype)

    stats_ref[...] += upd


def _gn_norm_gelu_kernel(x_ref, stats_ref, gamma_ref, beta_ref, o_ref, *,
                         t_valid, approximate_gelu):
    # GroupNorm layer, pass 2: normalize with the full-time stats, affine, GELU.
    x = x_ref[0].astype(jnp.float32)                               # (t_tile, C_out)
    st = stats_ref[0]                                              # (2, C_out)
    inv_n = 1.0 / float(t_valid)
    mean = st[0:1, :] * inv_n
    var = st[1:2, :] * inv_n - mean * mean
    scale = gamma_ref[...] * jax.lax.rsqrt(var + _GN_EPS)          # gamma folded into rsqrt
    y = (x - mean) * scale + beta_ref[...]
    o_ref[0] = _gelu(y, approximate_gelu).astype(o_ref.dtype)


# ---------------------------------------------------------------------------
# Static helpers (weights / tiling plan)
# ---------------------------------------------------------------------------
def _tap_groups(kernel_size, stride, c_in):
    nq = -(-kernel_size // stride)
    return tuple((q, min(stride, kernel_size - q * stride) * c_in) for q in range(nq))


def _stack_weight(w, stride, mxu_dtype):
    """(C_out, C_in, K) conv weight -> (NQ, stride*C_in, C_out); tap k=q*stride+r at row r*C_in+c."""
    c_out, c_in, k = w.shape
    nq = -(-k // stride)
    ws = jnp.zeros((nq, stride * c_in, c_out), jnp.float32)
    for q in range(nq):
        width = min(stride, k - q * stride)
        blk = jnp.transpose(w[:, :, q * stride:q * stride + width], (2, 1, 0))
        ws = ws.at[q, :width * c_in, :].set(blk.reshape(width * c_in, c_out))
    return ws.astype(mxu_dtype)


def _deint(x, stride):
    b, t, c = x.shape
    assert t % stride == 0
    return x.reshape(b, t // stride, stride * c)                   # free row-major reshape


def _pick_time_tile(requested, need_out, align, *, lane_in, c_out, nq,
                    in_bytes, out_bytes, vmem_budget_bytes):
    """VMEM-budget-aware time tile (counts double-buffered blocks + in-kernel temps)."""
    lane_in_p = _round_up(lane_in, 128)
    lane_out_p = _round_up(c_out, 128)
    cap = _round_up(max(need_out, 1), align)
    tt = min(_round_up(max(requested, align), align), cap)
    w_bytes = nq * _round_up(lane_in, 8) * lane_out_p * in_bytes
    while True:
        est = (2 * tt * lane_in_p * in_bytes                       # main input block (x2 buffers)
               + 2 * _HALO * lane_in_p * in_bytes                  # halo block
               + (tt + _HALO) * lane_in_p * in_bytes               # in-kernel window concat
               + 2 * w_bytes                                       # weights
               + 2 * tt * lane_out_p * out_bytes                   # output tile
               + 2 * tt * lane_out_p * 4)                          # f32 accumulator / epilogue temps
        if est <= vmem_budget_bytes or tt <= align:
            break
        tt = max(align, _round_up(tt // 2, align))
    return tt


# ---------------------------------------------------------------------------
# Per-layer pallas_call wrappers
# ---------------------------------------------------------------------------
def _conv_layer_call(x, w_stack, bias2, *, stride, groups, n_t, t_tile, out_dtype,
                     approximate_gelu, vmem_limit_bytes):
    b = x.shape[0]
    xd = _deint(x, stride)
    lane = xd.shape[2]
    nq, _, c_out = w_stack.shape
    out_rows = n_t * t_tile
    kern = functools.partial(_conv_bias_gelu_kernel, t_tile=t_tile, groups=groups,
                             approximate_gelu=approximate_gelu)
    return pl.pallas_call(
        kern,
        out_shape=jax.ShapeDtypeStruct((b, out_rows, c_out), out_dtype),
        grid=(b, n_t),
        in_specs=[
            pl.BlockSpec((1, t_tile, lane), lambda bi, ti: (bi, ti, 0)),
            pl.BlockSpec((1, _HALO, lane), lambda bi, ti: (bi, (ti + 1) * (t_tile // _HALO), 0)),
            pl.BlockSpec((nq, lane, c_out), lambda bi, ti: (0, 0, 0)),
            pl.BlockSpec((1, c_out), lambda bi, ti: (0, 0)),
        ],
        out_specs=pl.BlockSpec((1, t_tile, c_out), lambda bi, ti: (bi, ti, 0)),
        compiler_params=pltpu.CompilerParams(
            dimension_semantics=("parallel", "parallel"),
            vmem_limit_bytes=vmem_limit_bytes),
    )(xd, xd, w_stack, bias2)


def _gn_conv_pass1_call(x, w_stack, *, stride, groups, n_t, t_tile, t_valid,
                        vmem_limit_bytes):
    b = x.shape[0]
    xd = _deint(x, stride)
    lane = xd.shape[2]
    nq, _, c_out = w_stack.shape
    out_rows = n_t * t_tile
    kern = functools.partial(_gn_conv_stats_kernel, t_tile=t_tile, groups=groups,
                             t_valid=t_valid)
    return pl.pallas_call(
        kern,
        out_shape=(jax.ShapeDtypeStruct((b, out_rows, c_out), jnp.float32),
                   jax.ShapeDtypeStruct((b, 2, c_out), jnp.float32)),
        grid=(b, n_t),
        in_specs=[
            pl.BlockSpec((1, t_tile, lane), lambda bi, ti: (bi, ti, 0)),
            pl.BlockSpec((1, _HALO, lane), lambda bi, ti: (bi, (ti + 1) * (t_tile // _HALO), 0)),
            pl.BlockSpec((nq, lane, c_out), lambda bi, ti: (0, 0, 0)),
        ],
        out_specs=(pl.BlockSpec((1, t_tile, c_out), lambda bi, ti: (bi, ti, 0)),
                   pl.BlockSpec((1, 2, c_out), lambda bi, ti: (bi, 0, 0))),
        compiler_params=pltpu.CompilerParams(
            dimension_semantics=("parallel", "arbitrary"),   # stats carry over time
            vmem_limit_bytes=vmem_limit_bytes),
    )(xd, xd, w_stack)


def _gn_pass2_call(conv_raw, stats, gamma2, beta2, *, n_t, t_tile, t_valid, out_dtype,
                   approximate_gelu, vmem_limit_bytes):
    b, _, c_out = conv_raw.shape
    kern = functools.partial(_gn_norm_gelu_kernel, t_valid=t_valid,
                             approximate_gelu=approximate_gelu)
    return pl.pallas_call(
        kern,
        out_shape=jax.ShapeDtypeStruct(conv_raw.shape, out_dtype),
        grid=(b, n_t),
        in_specs=[
            pl.BlockSpec((1, t_tile, c_out), lambda bi, ti: (bi, ti, 0)),
            pl.BlockSpec((1, 2, c_out), lambda bi, ti: (bi, 0, 0)),
            pl.BlockSpec((1, c_out), lambda bi, ti: (0, 0)),
            pl.BlockSpec((1, c_out), lambda bi, ti: (0, 0)),
        ],
        out_specs=pl.BlockSpec((1, t_tile, c_out), lambda bi, ti: (bi, ti, 0)),
        compiler_params=pltpu.CompilerParams(
            dimension_semantics=("parallel", "parallel"),
            vmem_limit_bytes=vmem_limit_bytes),
    )(conv_raw, stats, gamma2, beta2)


# ---------------------------------------------------------------------------
# FeatureEncoder forward (public interface matches the PyTorch module: NCT in/out)
# ---------------------------------------------------------------------------
def _get_feat_extract_output_lengths(input_lengths, kernels, strides):
    out = input_lengths
    for k, s in zip(kernels, strides):
        out = (out - k) // s + 1
    return out


def _get_feature_vector_padding_mask(feature_vector_length, padding_mask, kernels, strides):
    non_padded_lengths = jnp.cumsum(padding_mask, axis=-1)[:, -1]
    output_lengths = _get_feat_extract_output_lengths(
        non_padded_lengths, kernels, strides).astype(jnp.int32)
    pos = jnp.arange(feature_vector_length, dtype=jnp.int32)
    return pos[None, :] < output_lengths[:, None]


def feature_encoder_forward(hidden_states, padding_mask, params, kernels, strides, *,
                            time_tile=512, vmem_budget_bytes=40 * 1024 * 1024,
                            vmem_limit_bytes=48 * 1024 * 1024, approximate_gelu=True):
    """hidden_states: (B, C_in, T) f32 (NCT).  Returns ((B, C_out, T_out) f32, bool mask)."""
    B, c_in0, t_raw = hidden_states.shape
    L = len(kernels)
    c_ins = [params[f"w{i}"].shape[1] for i in range(L)]
    c_outs = [params[f"w{i}"].shape[0] for i in range(L)]

    # ---- static tiling plan (backward): each layer's physical (tile-padded) output is
    # exactly what the next layer needs, so no HBM crop/pad between layers (one final crop).
    t_valid = [t_raw]
    for k, s in zip(kernels, strides):
        t_valid.append((t_valid[-1] - k) // s + 1)

    tts, nts = [0] * L, [0] * L
    req_next = 0
    for i in reversed(range(L)):
        nq = -(-kernels[i] // strides[i])
        assert nq - 1 <= _HALO, "kernel/stride ratio too large for the fixed halo"
        s_next = strides[i + 1] if i + 1 < L else 1
        align = math.lcm(8, s_next)                      # keeps output divisible by next stride
        need_out = max(t_valid[i + 1], req_next)
        in_b = 4 if i == 0 else 2
        out_b = 4 if (i == 0 or i == L - 1) else 2
        tt = _pick_time_tile(time_tile, need_out, align,
                             lane_in=strides[i] * c_ins[i], c_out=c_outs[i], nq=nq,
                             in_bytes=in_b, out_bytes=out_b,
                             vmem_budget_bytes=vmem_budget_bytes)
        nt = -(-need_out // tt)
        tts[i], nts[i] = tt, nt
        req_next = strides[i] * (nt * tt + _HALO)        # physical input rows layer i needs

    # ---- run ----
    h = jnp.transpose(hidden_states, (0, 2, 1)).astype(jnp.float32)       # NCT -> NTC
    p_in0 = strides[0] * max(-(-t_raw // strides[0]), nts[0] * tts[0] + _HALO)
    if p_in0 > t_raw:
        h = jnp.pad(h, ((0, 0), (0, p_in0 - t_raw), (0, 0)))              # raw waveform only (cheap)

    # Layer 0: GroupNormConvLayer (two-pass tiled GroupNorm).  params["b0"] is intentionally
    # unused: the per-channel mean subtraction cancels the conv bias exactly.
    w_stack0 = _stack_weight(params["w0"], strides[0], jnp.float32)
    groups0 = _tap_groups(kernels[0], strides[0], c_ins[0])
    conv_raw, stats = _gn_conv_pass1_call(h, w_stack0, stride=strides[0], groups=groups0,
                                          n_t=nts[0], t_tile=tts[0], t_valid=t_valid[1],
                                          vmem_limit_bytes=vmem_limit_bytes)
    gamma2 = params["gn_gamma"].reshape(1, -1).astype(jnp.float32)
    beta2 = params["gn_beta"].reshape(1, -1).astype(jnp.float32)
    dt0 = jnp.float32 if L == 1 else jnp.bfloat16
    h = _gn_pass2_call(conv_raw, stats, gamma2, beta2, n_t=nts[0], t_tile=tts[0],
                       t_valid=t_valid[1], out_dtype=dt0, approximate_gelu=approximate_gelu,
                       vmem_limit_bytes=vmem_limit_bytes)

    # Layers 1..L-1: Conv1d + bias + GELU (bf16 intermediates, f32 final).
    for i in range(1, L):
        w_stack = _stack_weight(params[f"w{i}"], strides[i], jnp.bfloat16)
        groups = _tap_groups(kernels[i], strides[i], c_ins[i])
        bias2 = params[f"b{i}"].reshape(1, -1).astype(jnp.float32)
        dt = jnp.float32 if i == L - 1 else jnp.bfloat16
        h = _conv_layer_call(h, w_stack, bias2, stride=strides[i], groups=groups,
                             n_t=nts[i], t_tile=tts[i], out_dtype=dt,
                             approximate_gelu=approximate_gelu,
                             vmem_limit_bytes=vmem_limit_bytes)

    # TODO(synk): for C_out < 128 (toy configs) the output lane dim is sub-128 and stores
    # are masked; at realistic wav2vec2 widths (C_out=512) this path is lane-dense.
    feats = jnp.transpose(h[:, :t_valid[L], :], (0, 2, 1))                # single crop, back to NCT
    if padding_mask is not None:
        padding_mask = _get_feature_vector_padding_mask(
            feats.shape[2], padding_mask, kernels, strides)
    return feats, padding_mask


# ---------------------------------------------------------------------------
# Parameter init + demo
# ---------------------------------------------------------------------------
def init_params(key, in_channel, out_channel, kernels, use_bias=True):
    keys = jax.random.split(key, 3 * len(kernels) + 2)
    params = {}
    c_in = in_channel
    for i, k in enumerate(kernels):
        params[f"w{i}"] = 0.1 * jax.random.normal(
            keys[3 * i], (out_channel, c_in, k), jnp.float32)
        if use_bias:
            params[f"b{i}"] = 0.1 * jax.random.normal(
                keys[3 * i + 1], (out_channel,), jnp.float32)
        else:
            params[f"b{i}"] = jnp.zeros((out_channel,), jnp.float32)
        c_in = out_channel
    params["gn_gamma"] = 1.0 + 0.05 * jax.random.normal(
        keys[-2], (out_channel,), jnp.float32)
    params["gn_beta"] = 0.05 * jax.random.normal(
        keys[-1], (out_channel,), jnp.float32)
    return params


if __name__ == "__main__":
    # Small FeatureEncoder config: raw-waveform style input (1 channel).
    in_channel, out_channel = 1, 32
    kernels = [10, 3, 3]
    strides = [5, 2, 2]
    B, T = 2, 128                      # hidden_states: (B, in_channel, T)

    root = jax.random.PRNGKey(0)
    k_x, k_p = jax.random.split(root)
    params = init_params(k_p, in_channel, out_channel, kernels, use_bias=True)
    hidden_states = jax.random.normal(k_x, (B, in_channel, T), jnp.float32)

    # attention-mask style padding mask (1 = valid), lengths 128 and 100
    lengths = jnp.array([128, 100], dtype=jnp.int32)
    padding_mask = (jnp.arange(T, dtype=jnp.int32)[None, :] < lengths[:, None]).astype(jnp.int32)

    @jax.jit
    def fwd(hs, pm, prm):
        return feature_encoder_forward(hs, pm, prm, kernels, strides)

    feats, out_mask = fwd(hidden_states, padding_mask, params)
    jax.block_until_ready(feats)
    jax.block_until_ready(out_mask)

    # sanity on shapes: (B, out_channel, T_out) with T_out = 5, mask (B, 5) bool
    assert feats.shape == (B, out_channel, 5) and feats.dtype == jnp.float32
    assert out_mask.shape == (B, 5) and out_mask.dtype == jnp.bool_
    print("KERNEL_OK")
</pallas_src>

<mosaic_0001>
module attributes {stable_mosaic.version = 11 : i64} {
  func.func @_gn_norm_gelu_kernel(%arg0: i32, %arg1: i32, %arg2: memref<1x80x32xf32, #tpu.memory_space<vmem>>, %arg3: memref<1x2x32xf32, #tpu.memory_space<vmem>>, %arg4: memref<1x32xf32, #tpu.memory_space<vmem>>, %arg5: memref<1x32xf32, #tpu.memory_space<vmem>>, %arg6: memref<1x80x32xbf16, #tpu.memory_space<vmem>>) attributes {dimension_semantics = [#tpu.dimension_semantics<parallel>, #tpu.dimension_semantics<parallel>], iteration_bounds = array<i64: 2, 1>, scalar_prefetch = 0 : i64, scratch_operands = 0 : i64, tpu.core_type = #tpu.core_type<tc>, window_params = [{transform_indices = @transform_0, window_bounds = array<i64: 1, 80, 32>}, {transform_indices = @transform_1, window_bounds = array<i64: 1, 2, 32>}, {pipeline_mode = #tpu.pipeline_mode<synchronous>, transform_indices = @transform_2, window_bounds = array<i64: 1, 32>}, {pipeline_mode = #tpu.pipeline_mode<synchronous>, transform_indices = @transform_3, window_bounds = array<i64: 1, 32>}, {transform_indices = @transform_4, window_bounds = array<i64: 1, 80, 32>}]} {
    %c0 = arith.constant 0 : index
    %c0_0 = arith.constant 0 : index
    %c0_1 = arith.constant 0 : index
    %0 = vector.load %arg2[%c0, %c0_0, %c0_1] : memref<1x80x32xf32, #tpu.memory_space<vmem>>, vector<1x80x32xf32>
    %1 = vector.shape_cast %0 : vector<1x80x32xf32> to vector<80x32xf32>
    %c0_2 = arith.constant 0 : index
    %c0_3 = arith.constant 0 : index
    %c0_4 = arith.constant 0 : index
    %2 = vector.load %arg3[%c0_2, %c0_3, %c0_4] : memref<1x2x32xf32, #tpu.memory_space<vmem>>, vector<1x2x32xf32>
    %3 = vector.shape_cast %2 : vector<1x2x32xf32> to vector<2x32xf32>
    %4 = vector.extract_strided_slice %3 {offsets = [0, 0], sizes = [1, 32], strides = [1, 1]} : vector<2x32xf32> to vector<1x32xf32>
    %cst = arith.constant 0.0416666679 : f32
    %5 = vector.broadcast %cst : f32 to vector<1x32xf32>
    %6 = arith.mulf %4, %5 : vector<1x32xf32>
    %7 = vector.extract_strided_slice %3 {offsets = [1, 0], sizes = [1, 32], strides = [1, 1]} : vector<2x32xf32> to vector<1x32xf32>
    %cst_5 = arith.constant 0.0416666679 : f32
    %8 = vector.broadcast %cst_5 : f32 to vector<1x32xf32>
    %9 = arith.mulf %7, %8 : vector<1x32xf32>
    %10 = arith.mulf %6, %6 : vector<1x32xf32>
    %11 = arith.subf %9, %10 : vector<1x32xf32>
    %c0_6 = arith.constant 0 : index
    %c0_7 = arith.constant 0 : index
    %12 = vector.load %arg4[%c0_6, %c0_7] : memref<1x32xf32, #tpu.memory_space<vmem>>, vector<1x32xf32>
    %cst_8 = arith.constant 9.99999974E-6 : f32
    %13 = vector.broadcast %cst_8 : f32 to vector<1x32xf32>
    %14 = arith.addf %11, %13 : vector<1x32xf32>
    %15 = math.rsqrt %14 : vector<1x32xf32>
    %16 = arith.mulf %12, %15 : vector<1x32xf32>
    %17 = vector.broadcast %6 : vector<1x32xf32> to vector<80x32xf32>
    %18 = arith.subf %1, %17 : vector<80x32xf32>
    %19 = vector.broadcast %16 : vector<1x32xf32> to vector<80x32xf32>
    %20 = arith.mulf %18, %19 : vector<80x32xf32>
    %c0_9 = arith.constant 0 : index
    %c0_10 = arith.constant 0 : index
    %21 = vector.load %arg5[%c0_9, %c0_10] : memref<1x32xf32, #tpu.memory_space<vmem>>, vector<1x32xf32>
    %22 = vector.broadcast %21 : vector<1x32xf32> to vector<80x32xf32>
    %23 = arith.addf %20, %22 : vector<80x32xf32>
    %cst_11 = arith.constant 5.000000e-01 : f32
    %24 = vector.broadcast %cst_11 : f32 to vector<80x32xf32>
    %25 = arith.mulf %24, %23 : vector<80x32xf32>
    %cst_12 = arith.constant 4.471500e-02 : f32
    %26 = vector.broadcast %cst_12 : f32 to vector<80x32xf32>
    %27 = arith.mulf %26, %23 : vector<80x32xf32>
    %28 = arith.mulf %27, %23 : vector<80x32xf32>
    %29 = arith.mulf %28, %23 : vector<80x32xf32>
    %30 = arith.addf %23, %29 : vector<80x32xf32>
    %cst_13 = arith.constant 0.797884583 : f32
    %31 = vector.broadcast %cst_13 : f32 to vector<80x32xf32>
    %32 = arith.mulf %31, %30 : vector<80x32xf32>
    %33 = math.tanh %32 : vector<80x32xf32>
    %cst_14 = arith.constant 1.000000e+00 : f32
    %34 = vector.broadcast %cst_14 : f32 to vector<80x32xf32>
    %35 = arith.addf %34, %33 : vector<80x32xf32>
    %36 = arith.mulf %25, %35 : vector<80x32xf32>
    %37 = arith.truncf %36 : vector<80x32xf32> to vector<80x32xbf16>
    %c0_15 = arith.constant 0 : index
    %c0_16 = arith.constant 0 : index
    %c0_17 = arith.constant 0 : index
    %38 = vector.load %arg6[%c0_15, %c0_16, %c0_17] : memref<1x80x32xbf16, #tpu.memory_space<vmem>>, vector<1x80x32xbf16>
    %39 = vector.shape_cast %38 : vector<1x80x32xbf16> to vector<80x32xbf16>
    %40 = vector.shape_cast %37 : vector<80x32xbf16> to vector<1x80x32xbf16>
    tpu.vector_store %arg6[%c0_15, %c0_16, %c0_17], %40 {strides = array<i32>} : memref<1x80x32xbf16, #tpu.memory_space<vmem>>, vector<1x80x32xbf16>,
    return
  }
  func.func @transform_0(%arg0: i32, %arg1: i32) -> (i32, i32, i32) {
    %c0_i32 = arith.constant 0 : i32
    %c0_i32_0 = arith.constant 0 : i32
    return %arg0, %arg1, %c0_i32 : i32, i32, i32
  }
  func.func @transform_1(%arg0: i32, %arg1: i32) -> (i32, i32, i32) {
    %c0_i32 = arith.constant 0 : i32
    %c0_i32_0 = arith.constant 0 : i32
    %c0_i32_1 = arith.constant 0 : i32
    return %arg0, %c0_i32, %c0_i32_0 : i32, i32, i32
  }
  func.func @transform_2(%arg0: i32, %arg1: i32) -> (i32, i32) {
    %c0_i32 = arith.constant 0 : i32
    %c0_i32_0 = arith.constant 0 : i32
    %c0_i32_1 = arith.constant 0 : i32
    return %c0_i32, %c0_i32_0 : i32, i32
  }
  func.func @transform_3(%arg0: i32, %arg1: i32) -> (i32, i32) {
    %c0_i32 = arith.constant 0 : i32
    %c0_i32_0 = arith.constant 0 : i32
    %c0_i32_1 = arith.constant 0 : i32
    return %c0_i32, %c0_i32_0 : i32, i32
  }
  func.func @transform_4(%arg0: i32, %arg1: i32) -> (i32, i32, i32) {
    %c0_i32 = arith.constant 0 : i32
    %c0_i32_0 = arith.constant 0 : i32
    return %arg0, %arg1, %c0_i32 : i32, i32, i32
  }
}

module attributes {stable_mosaic.version = 11 : i64} {
  func.func @_gn_conv_stats_kernel(%arg0: i32, %arg1: i32, %arg2: memref<1x80x5xf32, #tpu.memory_space<vmem>>, %arg3: memref<1x8x5xf32, #tpu.memory_space<vmem>>, %arg4: memref<2x5x32xf32, #tpu.memory_space<vmem>>, %arg5: memref<1x80x32xf32, #tpu.memory_space<vmem>>, %arg6: memref<1x2x32xf32, #tpu.memory_space<vmem>>) attributes {dimension_semantics = [#tpu.dimension_semantics<parallel>, #tpu.dimension_semantics<arbitrary>], iteration_bounds = array<i64: 2, 1>, scalar_prefetch = 0 : i64, scratch_operands = 0 : i64, tpu.core_type = #tpu.core_type<tc>, window_params = [{transform_indices = @transform_0, window_bounds = array<i64: 1, 80, 5>}, {transform_indices = @transform_1, window_bounds = array<i64: 1, 8, 5>}, {pipeline_mode = #tpu.pipeline_mode<synchronous>, transform_indices = @transform_2, window_bounds = array<i64: 2, 5, 32>}, {transform_indices = @transform_3, window_bounds = array<i64: 1, 80, 32>}, {transform_indices = @transform_4, window_bounds = array<i64: 1, 2, 32>}]} {
    %c0 = arith.constant 0 : index
    %c0_0 = arith.constant 0 : index
    %c0_1 = arith.constant 0 : index
    %0 = vector.load %arg2[%c0, %c0_0, %c0_1] : memref<1x80x5xf32, #tpu.memory_space<vmem>>, vector<1x80x5xf32>
    %1 = vector.shape_cast %0 : vector<1x80x5xf32> to vector<80x5xf32>
    %c0_2 = arith.constant 0 : index
    %c0_3 = arith.constant 0 : index
    %c0_4 = arith.constant 0 : index
    %2 = vector.load %arg3[%c0_2, %c0_3, %c0_4] : memref<1x8x5xf32, #tpu.memory_space<vmem>>, vector<1x8x5xf32>
    %3 = vector.shape_cast %2 : vector<1x8x5xf32> to vector<8x5xf32>
    %4 = tpu.concatenate %1, %3 in 0 : vector<80x5xf32>, vector<8x5xf32> -> vector<88x5xf32>
    %cst = arith.constant 0.000000e+00 : f32
    %5 = vector.broadcast %cst : f32 to vector<80x32xf32>
    %6 = vector.extract_strided_slice %4 {offsets = [0, 0], sizes = [80, 5], strides = [1, 1]} : vector<88x5xf32> to vector<80x5xf32>
    %c0_5 = arith.constant 0 : index
    %c0_6 = arith.constant 0 : index
    %c0_7 = arith.constant 0 : index
    %7 = vector.load %arg4[%c0_5, %c0_6, %c0_7] : memref<2x5x32xf32, #tpu.memory_space<vmem>>, vector<1x5x32xf32>
    %8 = vector.shape_cast %7 : vector<1x5x32xf32> to vector<5x32xf32>
    %cst_8 = arith.constant dense<0.000000e+00> : vector<80x32xf32>
    %9 = tpu.matmul %6, %8, %cst_8 {dimension_numbers = #tpu.dot_dimension_numbers<[1], [0], [0], [1], [0, 0, 1, 1], [], []>} : vector<80x5xf32>, vector<5x32xf32>, vector<80x32xf32> -> vector<80x32xf32>
    %10 = arith.addf %5, %9 : vector<80x32xf32>
    %11 = vector.extract_strided_slice %4 {offsets = [1, 0], sizes = [80, 5], strides = [1, 1]} : vector<88x5xf32> to vector<80x5xf32>
    %c1 = arith.constant 1 : index
    %c0_9 = arith.constant 0 : index
    %c0_10 = arith.constant 0 : index
    %12 = vector.load %arg4[%c1, %c0_9, %c0_10] : memref<2x5x32xf32, #tpu.memory_space<vmem>>, vector<1x5x32xf32>
    %13 = vector.shape_cast %12 : vector<1x5x32xf32> to vector<5x32xf32>
    %cst_11 = arith.constant dense<0.000000e+00> : vector<80x32xf32>
    %14 = tpu.matmul %11, %13, %cst_11 {dimension_numbers = #tpu.dot_dimension_numbers<[1], [0], [0], [1], [0, 0, 1, 1], [], []>} : vector<80x5xf32>, vector<5x32xf32>, vector<80x32xf32> -> vector<80x32xf32>
    %15 = arith.addf %10, %14 : vector<80x32xf32>
    %c0_12 = arith.constant 0 : index
    %c0_13 = arith.constant 0 : index
    %c0_14 = arith.constant 0 : index
    %16 = vector.load %arg5[%c0_12, %c0_13, %c0_14] : memref<1x80x32xf32, #tpu.memory_space<vmem>>, vector<1x80x32xf32>
    %17 = vector.shape_cast %16 : vector<1x80x32xf32> to vector<80x32xf32>
    %18 = vector.shape_cast %15 : vector<80x32xf32> to vector<1x80x32xf32>
    tpu.vector_store %arg5[%c0_12, %c0_13, %c0_14], %18 {strides = array<i32>} : memref<1x80x32xf32, #tpu.memory_space<vmem>>, vector<1x80x32xf32>,
    %c80_i32 = arith.constant 80 : i32
    %19 = arith.muli %arg1, %c80_i32 : i32
    %20 = tpu.iota {dimensions = array<i32: 0>} : vector<80x1xi32>
    %21 = vector.broadcast %19 : i32 to vector<80x1xi32>
    %22 = arith.addi %21, %20 : vector<80x1xi32>
    %c24_i32 = arith.constant 24 : i32
    %23 = vector.broadcast %c24_i32 : i32 to vector<80x1xi32>
    %24 = arith.cmpi slt, %22, %23 : vector<80x1xi32>
    %25 = arith.extui %24 : vector<80x1xi1> to vector<80x1xi32>
    %26 = arith.sitofp %25 : vector<80x1xi32> to vector<80x1xf32>
    %27 = vector.broadcast %26 : vector<80x1xf32> to vector<80x32xf32>
    %28 = arith.mulf %15, %27 : vector<80x32xf32>
    %cst_15 = arith.constant dense<0.000000e+00> : vector<32xf32>
    %29 = vector.multi_reduction <add>, %28, %cst_15 [0] : vector<80x32xf32> to vector<32xf32>
    %30 = vector.shape_cast %29 : vector<32xf32> to vector<1x32xf32>
    %31 = arith.mulf %28, %28 : vector<80x32xf32>
    %cst_16 = arith.constant dense<0.000000e+00> : vector<32xf32>
    %32 = vector.multi_reduction <add>, %31, %cst_16 [0] : vector<80x32xf32> to vector<32xf32>
    %33 = vector.shape_cast %32 : vector<32xf32> to vector<1x32xf32>
    %34 = tpu.concatenate %30, %33 in 0 : vector<1x32xf32>, vector<1x32xf32> -> vector<2x32xf32>
    %35 = vector.shape_cast %34 : vector<2x32xf32> to vector<1x2x32xf32>
    %c0_i32 = arith.constant 0 : i32
    %36 = arith.cmpi eq, %arg1, %c0_i32 : i32
    %37 = arith.extui %36 : i1 to i32
    %c0_i32_17 = arith.constant 0 : i32
    %38 = arith.cmpi ne, %37, %c0_i32_17 : i32
    scf.if %38 {
      %cst_24 = arith.constant 0.000000e+00 : f32
      %42 = vector.broadcast %cst_24 : f32 to vector<1x2x32xf32>
      %c0_25 = arith.constant 0 : index
      %c0_26 = arith.constant 0 : index
      %c0_27 = arith.constant 0 : index
      %43 = vector.load %arg6[%c0_25, %c0_26, %c0_27] : memref<1x2x32xf32, #tpu.memory_space<vmem>>, vector<1x2x32xf32>
      tpu.vector_store %arg6[%c0_25, %c0_26, %c0_27], %42 {strides = array<i32>} : memref<1x2x32xf32, #tpu.memory_space<vmem>>, vector<1x2x32xf32>,
    } else {
    }
    %c0_18 = arith.constant 0 : index
    %c0_19 = arith.constant 0 : index
    %c0_20 = arith.constant 0 : index
    %39 = vector.load %arg6[%c0_18, %c0_19, %c0_20] : memref<1x2x32xf32, #tpu.memory_space<vmem>>, vector<1x2x32xf32>
    %40 = arith.addf %39, %35 : vector<1x2x32xf32>
    %c0_21 = arith.constant 0 : index
    %c0_22 = arith.constant 0 : index
    %c0_23 = arith.constant 0 : index
    %41 = vector.load %arg6[%c0_21, %c0_22, %c0_23] : memref<1x2x32xf32, #tpu.memory_space<vmem>>, vector<1x2x32xf32>
    tpu.vector_store %arg6[%c0_21, %c0_22, %c0_23], %40 {strides = array<i32>} : memref<1x2x32xf32, #tpu.memory_space<vmem>>, vector<1x2x32xf32>,
    return
  }
  func.func @transform_0(%arg0: i32, %arg1: i32) -> (i32, i32, i32) {
    %c0_i32 = arith.constant 0 : i32
    %c0_i32_0 = arith.constant 0 : i32
    return %arg0, %arg1, %c0_i32 : i32, i32, i32
  }
  func.func @transform_1(%arg0: i32, %arg1: i32) -> (i32, i32, i32) {
    %c1_i32 = arith.constant 1 : i32
    %0 = arith.addi %arg1, %c1_i32 : i32
    %c10_i32 = arith.constant 10 : i32
    %1 = arith.muli %0, %c10_i32 : i32
    %c0_i32 = arith.constant 0 : i32
    %c0_i32_0 = arith.constant 0 : i32
    return %arg0, %1, %c0_i32 : i32, i32, i32
  }
  func.func @transform_2(%arg0: i32, %arg1: i32) -> (i32, i32, i32) {
    %c0_i32 = arith.constant 0 : i32
    %c0_i32_0 = arith.constant 0 : i32
    %c0_i32_1 = arith.constant 0 : i32
    %c0_i32_2 = arith.constant 0 : i32
    return %c0_i32, %c0_i32_0, %c0_i32_1 : i32, i32, i32
  }
  func.func @transform_3(%arg0: i32, %arg1: i32) -> (i32, i32, i32) {
    %c0_i32 = arith.constant 0 : i32
    %c0_i32_0 = arith.constant 0 : i32
    return %arg0, %arg1, %c0_i32 : i32, i32, i32
  }
  func.func @transform_4(%arg0: i32, %arg1: i32) -> (i32, i32, i32) {
    %c0_i32 = arith.constant 0 : i32
    %c0_i32_0 = arith.constant 0 : i32
    %c0_i32_1 = arith.constant 0 : i32
    return %arg0, %c0_i32, %c0_i32_0 : i32, i32, i32
  }
}

module attributes {stable_mosaic.version = 11 : i64} {
  func.func @_conv_bias_gelu_kernel(%arg0: i32, %arg1: i32, %arg2: memref<1x32x64xbf16, #tpu.memory_space<vmem>>, %arg3: memref<1x8x64xbf16, #tpu.memory_space<vmem>>, %arg4: memref<2x64x32xbf16, #tpu.memory_space<vmem>>, %arg5: memref<1x32xf32, #tpu.memory_space<vmem>>, %arg6: memref<1x32x32xbf16, #tpu.memory_space<vmem>>) attributes {dimension_semantics = [#tpu.dimension_semantics<parallel>, #tpu.dimension_semantics<parallel>], iteration_bounds = array<i64: 2, 1>, scalar_prefetch = 0 : i64, scratch_operands = 0 : i64, tpu.core_type = #tpu.core_type<tc>, window_params = [{transform_indices = @transform_0, window_bounds = array<i64: 1, 32, 64>}, {transform_indices = @transform_1, window_bounds = array<i64: 1, 8, 64>}, {pipeline_mode = #tpu.pipeline_mode<synchronous>, transform_indices = @transform_2, window_bounds = array<i64: 2, 64, 32>}, {pipeline_mode = #tpu.pipeline_mode<synchronous>, transform_indices = @transform_3, window_bounds = array<i64: 1, 32>}, {transform_indices = @transform_4, window_bounds = array<i64: 1, 32, 32>}]} {
    %c0 = arith.constant 0 : index
    %c0_0 = arith.constant 0 : index
    %c0_1 = arith.constant 0 : index
    %0 = vector.load %arg2[%c0, %c0_0, %c0_1] : memref<1x32x64xbf16, #tpu.memory_space<vmem>>, vector<1x32x64xbf16>
    %1 = vector.shape_cast %0 : vector<1x32x64xbf16> to vector<32x64xbf16>
    %c0_2 = arith.constant 0 : index
    %c0_3 = arith.constant 0 : index
    %c0_4 = arith.constant 0 : index
    %2 = vector.load %arg3[%c0_2, %c0_3, %c0_4] : memref<1x8x64xbf16, #tpu.memory_space<vmem>>, vector<1x8x64xbf16>
    %3 = vector.shape_cast %2 : vector<1x8x64xbf16> to vector<8x64xbf16>
    %4 = tpu.concatenate %1, %3 in 0 : vector<32x64xbf16>, vector<8x64xbf16> -> vector<40x64xbf16>
    %cst = arith.constant 0.000000e+00 : f32
    %5 = vector.broadcast %cst : f32 to vector<32x32xf32>
    %6 = vector.extract_strided_slice %4 {offsets = [0, 0], sizes = [32, 64], strides = [1, 1]} : vector<40x64xbf16> to vector<32x64xbf16>
    %c0_5 = arith.constant 0 : index
    %c0_6 = arith.constant 0 : index
    %c0_7 = arith.constant 0 : index
    %7 = vector.load %arg4[%c0_5, %c0_6, %c0_7] : memref<2x64x32xbf16, #tpu.memory_space<vmem>>, vector<1x64x32xbf16>
    %8 = vector.shape_cast %7 : vector<1x64x32xbf16> to vector<64x32xbf16>
    %cst_8 = arith.constant dense<0.000000e+00> : vector<32x32xf32>
    %9 = tpu.matmul %6, %8, %cst_8 {dimension_numbers = #tpu.dot_dimension_numbers<[1], [0], [0], [1], [0, 0, 1, 1], [], []>} : vector<32x64xbf16>, vector<64x32xbf16>, vector<32x32xf32> -> vector<32x32xf32>
    %10 = arith.addf %5, %9 : vector<32x32xf32>
    %11 = vector.extract_strided_slice %4 {offsets = [1, 0], sizes = [32, 32], strides = [1, 1]} : vector<40x64xbf16> to vector<32x32xbf16>
    %c1 = arith.constant 1 : index
    %c0_9 = arith.constant 0 : index
    %c0_10 = arith.constant 0 : index
    %12 = vector.load %arg4[%c1, %c0_9, %c0_10] : memref<2x64x32xbf16, #tpu.memory_space<vmem>>, vector<1x64x32xbf16>
    %13 = vector.shape_cast %12 : vector<1x64x32xbf16> to vector<64x32xbf16>
    %14 = vector.extract_strided_slice %13 {offsets = [0, 0], sizes = [32, 32], strides = [1, 1]} : vector<64x32xbf16> to vector<32x32xbf16>
    %cst_11 = arith.constant dense<0.000000e+00> : vector<32x32xf32>
    %15 = tpu.matmul %11, %14, %cst_11 {dimension_numbers = #tpu.dot_dimension_numbers<[1], [0], [0], [1], [0, 0, 1, 1], [], []>} : vector<32x32xbf16>, vector<32x32xbf16>, vector<32x32xf32> -> vector<32x32xf32>
    %16 = arith.addf %10, %15 : vector<32x32xf32>
    %c0_12 = arith.constant 0 : index
    %c0_13 = arith.constant 0 : index
    %17 = vector.load %arg5[%c0_12, %c0_13] : memref<1x32xf32, #tpu.memory_space<vmem>>, vector<1x32xf32>
    %18 = vector.broadcast %17 : vector<1x32xf32> to vector<32x32xf32>
    %19 = arith.addf %16, %18 : vector<32x32xf32>
    %cst_14 = arith.constant 5.000000e-01 : f32
    %20 = vector.broadcast %cst_14 : f32 to vector<32x32xf32>
    %21 = arith.mulf %20, %19 : vector<32x32xf32>
    %cst_15 = arith.constant 4.471500e-02 : f32
    %22 = vector.broadcast %cst_15 : f32 to vector<32x32xf32>
    %23 = arith.mulf %22, %19 : vector<32x32xf32>
    %24 = arith.mulf %23, %19 : vector<32x32xf32>
    %25 = arith.mulf %24, %19 : vector<32x32xf32>
    %26 = arith.addf %19, %25 : vector<32x32xf32>
    %cst_16 = arith.constant 0.797884583 : f32
    %27 = vector.broadcast %cst_16 : f32 to vector<32x32xf32>
    %28 = arith.mulf %27, %26 : vector<32x32xf32>
    %29 = math.tanh %28 : vector<32x32xf32>
    %cst_17 = arith.constant 1.000000e+00 : f32
    %30 = vector.broadcast %cst_17 : f32 to vector<32x32xf32>
    %31 = arith.addf %30, %29 : vector<32x32xf32>
    %32 = arith.mulf %21, %31 : vector<32x32xf32>
    %33 = arith.truncf %32 : vector<32x32xf32> to vector<32x32xbf16>
    %c0_18 = arith.constant 0 : index
    %c0_19 = arith.constant 0 : index
    %c0_20 = arith.constant 0 : index
    %34 = vector.load %arg6[%c0_18, %c0_19, %c0_20] : memref<1x32x32xbf16, #tpu.memory_space<vmem>>, vector<1x32x32xbf16>
    %35 = vector.shape_cast %34 : vector<1x32x32xbf16> to vector<32x32xbf16>
    %36 = vector.shape_cast %33 : vector<32x32xbf16> to vector<1x32x32xbf16>
    tpu.vector_store %arg6[%c0_18, %c0_19, %c0_20], %36 {strides = array<i32>} : memref<1x32x32xbf16, #tpu.memory_space<vmem>>, vector<1x32x32xbf16>,
    return
  }
  func.func @transform_0(%arg0: i32, %arg1: i32) -> (i32, i32, i32) {
    %c0_i32 = arith.constant 0 : i32
    %c0_i32_0 = arith.constant 0 : i32
    return %arg0, %arg1, %c0_i32 : i32, i32, i32
  }
  func.func @transform_1(%arg0: i32, %arg1: i32) -> (i32, i32, i32) {
    %c1_i32 = arith.constant 1 : i32
    %0 = arith.addi %arg1, %c1_i32 : i32
    %c4_i32 = arith.constant 4 : i32
    %1 = arith.muli %0, %c4_i32 : i32
    %c0_i32 = arith.constant 0 : i32
    %c0_i32_0 = arith.constant 0 : i32
    return %arg0, %1, %c0_i32 : i32, i32, i32
  }
  func.func @transform_2(%arg0: i32, %arg1: i32) -> (i32, i32, i32) {
    %c0_i32 = arith.constant 0 : i32
    %c0_i32_0 = arith.constant 0 : i32
    %c0_i32_1 = arith.constant 0 : i32
    %c0_i32_2 = arith.constant 0 : i32
    return %c0_i32, %c0_i32_0, %c0_i32_1 : i32, i32, i32
  }
  func.func @transform_3(%arg0: i32, %arg1: i32) -> (i32, i32) {
    %c0_i32 = arith.constant 0 : i32
    %c0_i32_0 = arith.constant 0 : i32
    %c0_i32_1 = arith.constant 0 : i32
    return %c0_i32, %c0_i32_0 : i32, i32
  }
  func.func @transform_4(%arg0: i32, %arg1: i32) -> (i32, i32, i32) {
    %c0_i32 = arith.constant 0 : i32
    %c0_i32_0 = arith.constant 0 : i32
    return %arg0, %arg1, %c0_i32 : i32, i32, i32
  }
}

module attributes {stable_mosaic.version = 11 : i64} {
  func.func @_conv_bias_gelu_kernel(%arg0: i32, %arg1: i32, %arg2: memref<1x8x64xbf16, #tpu.memory_space<vmem>>, %arg3: memref<1x8x64xbf16, #tpu.memory_space<vmem>>, %arg4: memref<2x64x32xbf16, #tpu.memory_space<vmem>>, %arg5: memref<1x32xf32, #tpu.memory_space<vmem>>, %arg6: memref<1x8x32xf32, #tpu.memory_space<vmem>>) attributes {dimension_semantics = [#tpu.dimension_semantics<parallel>, #tpu.dimension_semantics<parallel>], iteration_bounds = array<i64: 2, 1>, scalar_prefetch = 0 : i64, scratch_operands = 0 : i64, tpu.core_type = #tpu.core_type<tc>, window_params = [{transform_indices = @transform_0, window_bounds = array<i64: 1, 8, 64>}, {transform_indices = @transform_1, window_bounds = array<i64: 1, 8, 64>}, {pipeline_mode = #tpu.pipeline_mode<synchronous>, transform_indices = @transform_2, window_bounds = array<i64: 2, 64, 32>}, {pipeline_mode = #tpu.pipeline_mode<synchronous>, transform_indices = @transform_3, window_bounds = array<i64: 1, 32>}, {transform_indices = @transform_4, window_bounds = array<i64: 1, 8, 32>}]} {
    %c0 = arith.constant 0 : index
    %c0_0 = arith.constant 0 : index
    %c0_1 = arith.constant 0 : index
    %0 = vector.load %arg2[%c0, %c0_0, %c0_1] : memref<1x8x64xbf16, #tpu.memory_space<vmem>>, vector<1x8x64xbf16>
    %1 = vector.shape_cast %0 : vector<1x8x64xbf16> to vector<8x64xbf16>
    %c0_2 = arith.constant 0 : index
    %c0_3 = arith.constant 0 : index
    %c0_4 = arith.constant 0 : index
    %2 = vector.load %arg3[%c0_2, %c0_3, %c0_4] : memref<1x8x64xbf16, #tpu.memory_space<vmem>>, vector<1x8x64xbf16>
    %3 = vector.shape_cast %2 : vector<1x8x64xbf16> to vector<8x64xbf16>
    %4 = tpu.concatenate %1, %3 in 0 : vector<8x64xbf16>, vector<8x64xbf16> -> vector<16x64xbf16>
    %cst = arith.constant 0.000000e+00 : f32
    %5 = vector.broadcast %cst : f32 to vector<8x32xf32>
    %6 = vector.extract_strided_slice %4 {offsets = [0, 0], sizes = [8, 64], strides = [1, 1]} : vector<16x64xbf16> to vector<8x64xbf16>
    %c0_5 = arith.constant 0 : index
    %c0_6 = arith.constant 0 : index
    %c0_7 = arith.constant 0 : index
    %7 = vector.load %arg4[%c0_5, %c0_6, %c0_7] : memref<2x64x32xbf16, #tpu.memory_space<vmem>>, vector<1x64x32xbf16>
    %8 = vector.shape_cast %7 : vector<1x64x32xbf16> to vector<64x32xbf16>
    %cst_8 = arith.constant dense<0.000000e+00> : vector<8x32xf32>
    %9 = tpu.matmul %6, %8, %cst_8 {dimension_numbers = #tpu.dot_dimension_numbers<[1], [0], [0], [1], [0, 0, 1, 1], [], []>} : vector<8x64xbf16>, vector<64x32xbf16>, vector<8x32xf32> -> vector<8x32xf32>
    %10 = arith.addf %5, %9 : vector<8x32xf32>
    %11 = vector.extract_strided_slice %4 {offsets = [1, 0], sizes = [8, 32], strides = [1, 1]} : vector<16x64xbf16> to vector<8x32xbf16>
    %c1 = arith.constant 1 : index
    %c0_9 = arith.constant 0 : index
    %c0_10 = arith.constant 0 : index
    %12 = vector.load %arg4[%c1, %c0_9, %c0_10] : memref<2x64x32xbf16, #tpu.memory_space<vmem>>, vector<1x64x32xbf16>
    %13 = vector.shape_cast %12 : vector<1x64x32xbf16> to vector<64x32xbf16>
    %14 = vector.extract_strided_slice %13 {offsets = [0, 0], sizes = [32, 32], strides = [1, 1]} : vector<64x32xbf16> to vector<32x32xbf16>
    %cst_11 = arith.constant dense<0.000000e+00> : vector<8x32xf32>
    %15 = tpu.matmul %11, %14, %cst_11 {dimension_numbers = #tpu.dot_dimension_numbers<[1], [0], [0], [1], [0, 0, 1, 1], [], []>} : vector<8x32xbf16>, vector<32x32xbf16>, vector<8x32xf32> -> vector<8x32xf32>
    %16 = arith.addf %10, %15 : vector<8x32xf32>
    %c0_12 = arith.constant 0 : index
    %c0_13 = arith.constant 0 : index
    %17 = vector.load %arg5[%c0_12, %c0_13] : memref<1x32xf32, #tpu.memory_space<vmem>>, vector<1x32xf32>
    %18 = vector.broadcast %17 : vector<1x32xf32> to vector<8x32xf32>
    %19 = arith.addf %16, %18 : vector<8x32xf32>
    %cst_14 = arith.constant 5.000000e-01 : f32
    %20 = vector.broadcast %cst_14 : f32 to vector<8x32xf32>
    %21 = arith.mulf %20, %19 : vector<8x32xf32>
    %cst_15 = arith.constant 4.471500e-02 : f32
    %22 = vector.broadcast %cst_15 : f32 to vector<8x32xf32>
    %23 = arith.mulf %22, %19 : vector<8x32xf32>
    %24 = arith.mulf %23, %19 : vector<8x32xf32>
    %25 = arith.mulf %24, %19 : vector<8x32xf32>
    %26 = arith.addf %19, %25 : vector<8x32xf32>
    %cst_16 = arith.constant 0.797884583 : f32
    %27 = vector.broadcast %cst_16 : f32 to vector<8x32xf32>
    %28 = arith.mulf %27, %26 : vector<8x32xf32>
    %29 = math.tanh %28 : vector<8x32xf32>
    %cst_17 = arith.constant 1.000000e+00 : f32
    %30 = vector.broadcast %cst_17 : f32 to vector<8x32xf32>
    %31 = arith.addf %30, %29 : vector<8x32xf32>
    %32 = arith.mulf %21, %31 : vector<8x32xf32>
    %c0_18 = arith.constant 0 : index
    %c0_19 = arith.constant 0 : index
    %c0_20 = arith.constant 0 : index
    %33 = vector.load %arg6[%c0_18, %c0_19, %c0_20] : memref<1x8x32xf32, #tpu.memory_space<vmem>>, vector<1x8x32xf32>
    %34 = vector.shape_cast %33 : vector<1x8x32xf32> to vector<8x32xf32>
    %35 = vector.shape_cast %32 : vector<8x32xf32> to vector<1x8x32xf32>
    tpu.vector_store %arg6[%c0_18, %c0_19, %c0_20], %35 {strides = array<i32>} : memref<1x8x32xf32, #tpu.memory_space<vmem>>, vector<1x8x32xf32>,
    return
  }
  func.func @transform_0(%arg0: i32, %arg1: i32) -> (i32, i32, i32) {
    %c0_i32 = arith.constant 0 : i32
    %c0_i32_0 = arith.constant 0 : i32
    return %arg0, %arg1, %c0_i32 : i32, i32, i32
  }
  func.func @transform_1(%arg0: i32, %arg1: i32) -> (i32, i32, i32) {
    %c1_i32 = arith.constant 1 : i32
    %0 = arith.addi %arg1, %c1_i32 : i32
    %c1_i32_0 = arith.constant 1 : i32
    %1 = arith.muli %0, %c1_i32_0 : i32
    %c0_i32 = arith.constant 0 : i32
    %c0_i32_1 = arith.constant 0 : i32
    return %arg0, %1, %c0_i32 : i32, i32, i32
  }
  func.func @transform_2(%arg0: i32, %arg1: i32) -> (i32, i32, i32) {
    %c0_i32 = arith.constant 0 : i32
    %c0_i32_0 = arith.constant 0 : i32
    %c0_i32_1 = arith.constant 0 : i32
    %c0_i32_2 = arith.constant 0 : i32
    return %c0_i32, %c0_i32_0, %c0_i32_1 : i32, i32, i32
  }
  func.func @transform_3(%arg0: i32, %arg1: i32) -> (i32, i32) {
    %c0_i32 = arith.constant 0 : i32
    %c0_i32_0 = arith.constant 0 : i32
    %c0_i32_1 = arith.constant 0 : i32
    return %c0_i32, %c0_i32_0 : i32, i32
  }
  func.func @transform_4(%arg0: i32, %arg1: i32) -> (i32, i32, i32) {
    %c0_i32 = arith.constant 0 : i32
    %c0_i32_0 = arith.constant 0 : i32
    return %arg0, %arg1, %c0_i32 : i32, i32, i32
  }
}

</mosaic_0001>

<bundles_post_ra>
// kernel: fwd.5
= control target key start
LH: loop header
LB: loop body
LE: loop exit
PB: predicated region body
PF: predicated region fallthrough
CT: control target
= control target key end

     0   :  { %s709_s15 = smov 0   ;;  %s711_s16 = smov 0   ;;  %s884_s0 = inlined_call_operand.vmem [shape: f32[2,80,32], index: 0, kind: input, shape index: {}]   ;;  %s885_s1 = inlined_call_operand.vmem [shape: f32[2,2,32], index: 1, kind: input, shape index: {}]   ;;  %s886_s2 = inlined_call_operand.vmem [shape: f32[1,32], index: 2, kind: input, shape index: {}]   ;;  %s887_s3 = inlined_call_operand.vmem [shape: f32[1,32], index: 3, kind: input, shape index: {}]   ;;  %s888_s4 = inlined_call_operand.vmem [shape: bf16[2,80,32], index: 4, kind: output, shape index: {}]  }
   0x1   :  { %s713_s17 = smov 0  }
   0x2 LB: > { %s26_s18 = sadd.s32 1, %s677_s16  ;;  %p583_p0 = scmp.ge.s32.totalorder %s681_s17, 1  ;;  %s681_s17 = sphi %s713_s17, %s14_s17   ;;  %s677_s16 = sphi %s711_s16, %s890_s16   ;;  %s673_s15 = sphi %s709_s15, %s889_s15  }
   0x3   : > { %p28_p1 = scmp.ge.s32.totalorder %s26_s18, 2  ;;  %p192_p2 = scmp.lt.s32.totalorder %s681_s17, 3 }
   0x5   : > { %s892_s18 = smov (%p28_p1, %s26_s18), 0  ;;  %p193_p3 = pnand %p583_p0, %p192_p2 }
   0x6   : > { %p231_p4 = scmp.lt.s32.totalorder (!%p193_p3), %s673_s15, 1 }
   0x7   : > { %196 = sbr.rel (%p193_p3) target bundleno = 97 (0x61), region = 36 }
   0xc   : > { %s894_s15 = smov (!%p231_p4, %s673_s15), 1  ;;  %v683_v6 = vmov 1966171168   ;;  %v278_v8 = vlaneseq  ;;  %v271_v17 = vld [vmem:[%s886_s2] sm:$0x1]  ;;  %vm469_vm0 = vcmask 257024  }
   0xd   : > { %s585_s19 = sshll.u32 %s894_s15, 1  ;;  %v276_v7 = vunpack.c.l.s4 %v683_v6  ;;  %s610_s23 = smul.u32 80, %s894_s15  ;;  %v762_v36 = vld [vmem:[%s887_s3] ss:$0 sm:$0xff] }
   0xe   : > { %s243_s22 = scalar_lea.vmem %s885_s1, %s585_s19  ;;  %v279_v10 = vshrl.u32 %v278_v8, 7  ;;  %s611_s5 = smul.u32 40, %s894_s15 }
   0xf   : > { %v264_v0 = vld [vmem:[%s243_s22] sm:$0x3]  ;;  %v277_v9 = vunpack.c.0.s8 %v276_v7  ;;  %s737_s26 = scalar_lea.vmem %s884_s0, %s610_s23 }
  0x10   : > { %v265_v1 = vmul.f32 0.041666668, %v264_v0  ;;  %v294_v12 = vsub.s32 0, %v279_v10  ;;  %v254_v16 = vld [vmem:[%s737_s26] sm:$0xff]  ;;  %v255_v19 = vld [vmem:[%s737_s26 + $0x8] sm:$0xff]  ;;  %v256_v20 = vld [vmem:[%s737_s26 + $0x10] sm:$0xff]  ;;  %s848_s8 = scalar_lea.vmem %s888_s4, %s611_s5 }
  0x11   : > { %v280_v11 = vsub.s32 %v277_v9, %v279_v10  ;;  %v257_v21 = vld [vmem:[%s737_s26 + $0x18] sm:$0xff]  ;;  %v258_v23 = vld [vmem:[%s737_s26 + $0x20] sm:$0xff]  ;;  %v259_v24 = vld [vmem:[%s737_s26 + $0x28] sm:$0xff] }
  0x12   : > { %v266_v2 = vmul.f32 %v265_v1, %v265_v1  ;;  %v739_v15 = vrot.slane %v265_v1, %v294_v12  ;;  %v260_v25 = vld [vmem:[%s737_s26 + $0x30] sm:$0xff]  ;;  %v261_v31 = vld [vmem:[%s737_s26 + $0x38] sm:$0xff]  ;;  %v262_v54 = vld [vmem:[%s737_s26 + $0x40] sm:$0xff] }
  0x14   : > { %v268_v3 = vrot.slane %v266_v2, 7  ;;  %v296_v26 = vsub.f32 %v254_v16, %v739_v15  ;;  %v297_v28 = vsub.f32 %v255_v19, %v739_v15  ;;  %v298_v29 = vsub.f32 %v256_v20, %v739_v15 }
  0x15   : > { %v299_v30 = vsub.f32 %v257_v21, %v739_v15  ;;  %v300_v32 = vsub.f32 %v258_v23, %v739_v15  ;;  %v301_v33 = vsub.f32 %v259_v24, %v739_v15  ;;  %v302_v34 = vsub.f32 %v260_v25, %v739_v15 }
  0x16   : > { %v270_v4 = vsub.f32 %v265_v1, %v268_v3  ;;  %v303_v37 = vsub.f32 %v261_v31, %v739_v15  ;;  %v304_v0 = vsub.f32 %v262_v54, %v739_v15  ;;  %v263_v1 = vld [vmem:[%s737_s26 + $0x48] sm:$0xff] }
  0x18   : > { %v272_v5 = vadd.f32 1e-05, %v270_v4 }
  0x1a   : > { %637 = vrsqrt.f32 %v272_v5 }
  0x27   : > { %v638_v13 = vpop.eup %637 }
  0x28   : > { %v281_v14 = vrot.slane %v638_v13, %v280_v11  ;;  %v305_v13 = vsub.f32 %v263_v1, %v739_v15 }
  0x2a   : > { %v282_v18 = vcombine.high %v281_v14, %v281_v14 }
  0x2c   : > { %v289_v22 = vrot.slane %v282_v18, %v280_v11 }
  0x2e   : > { %v291_v27 = vmul.f32 %v289_v22, %v271_v17 }
  0x30   : > { %v310_v35 = vrot.slane %v291_v27, %v294_v12 }
  0x32   : > { %v312_v38 = vmul.f32 %v310_v35, %v296_v26  ;;  %v313_v39 = vmul.f32 %v310_v35, %v297_v28  ;;  %v314_v40 = vmul.f32 %v310_v35, %v298_v29  ;;  %v315_v41 = vmul.f32 %v310_v35, %v299_v30 }
  0x33   : > { %v316_v42 = vmul.f32 %v310_v35, %v300_v32  ;;  %v317_v43 = vmul.f32 %v310_v35, %v301_v33  ;;  %v318_v44 = vmul.f32 %v310_v35, %v302_v34  ;;  %v319_v53 = vmul.f32 %v310_v35, %v303_v37 }
  0x34   : > { %v766_v45 = vadd.f32 %v762_v36, %v312_v38  ;;  %v769_v46 = vadd.f32 %v762_v36, %v313_v39  ;;  %v772_v47 = vadd.f32 %v762_v36, %v314_v40  ;;  %v775_v48 = vadd.f32 %v762_v36, %v315_v41 }
  0x35   : > { %v778_v49 = vadd.f32 %v762_v36, %v316_v42  ;;  %v781_v50 = vadd.f32 %v762_v36, %v317_v43  ;;  %v789_v57 = vadd.f32 %v762_v36, %v318_v44  ;;  %v803_v5 = vadd.f32 %v762_v36, %v319_v53 }
  0x36   : > { %v349_v51 = vmul.f32 0.044715, %v766_v45  ;;  %v350_v52 = vmul.f32 0.044715, %v769_v46  ;;  %v351_v55 = vmul.f32 0.044715, %v772_v47  ;;  %v320_v28 = vmul.f32 %v310_v35, %v304_v0 }
  0x37   : > { %v352_v56 = vmul.f32 0.044715, %v775_v48  ;;  %v353_v60 = vmul.f32 0.044715, %v778_v49  ;;  %v354_v63 = vmul.f32 0.044715, %v781_v50  ;;  %v321_v31 = vmul.f32 %v310_v35, %v305_v13 }
  0x38   : > { %v359_v58 = vmul.f32 %v349_v51, %v766_v45  ;;  %v360_v59 = vmul.f32 %v350_v52, %v769_v46  ;;  %v361_v61 = vmul.f32 %v351_v55, %v772_v47  ;;  %v355_v9 = vmul.f32 0.044715, %v789_v57 }
  0x39   : > { %v362_v62 = vmul.f32 %v352_v56, %v775_v48  ;;  %v363_v4 = vmul.f32 %v353_v60, %v778_v49  ;;  %v364_v8 = vmul.f32 %v354_v63, %v781_v50  ;;  %v356_v22 = vmul.f32 0.044715, %v803_v5 }
  0x3a   : > { %v369_v2 = vmul.f32 %v359_v58, %v766_v45  ;;  %v370_v3 = vmul.f32 %v360_v59, %v769_v46  ;;  %v371_v6 = vmul.f32 %v361_v61, %v772_v47  ;;  %v365_v18 = vmul.f32 %v355_v9, %v789_v57 }
  0x3b   : > { %v372_v7 = vmul.f32 %v362_v62, %v775_v48  ;;  %v373_v12 = vmul.f32 %v363_v4, %v778_v49  ;;  %v374_v17 = vmul.f32 %v364_v8, %v781_v50  ;;  %v366_v27 = vmul.f32 %v356_v22, %v803_v5 }
  0x3c   : > { %v379_v10 = vadd.f32 %v369_v2, %v766_v45  ;;  %v380_v11 = vadd.f32 %v370_v3, %v769_v46  ;;  %v381_v14 = vadd.f32 %v371_v6, %v772_v47  ;;  %v375_v15 = vmul.f32 %v365_v18, %v789_v57 }
  0x3d   : > { %v382_v16 = vadd.f32 %v372_v7, %v775_v48  ;;  %v383_v21 = vadd.f32 %v373_v12, %v778_v49  ;;  %v384_v25 = vadd.f32 %v374_v17, %v781_v50  ;;  %v376_v32 = vmul.f32 %v366_v27, %v803_v5 }
  0x3e   : > { %v389_v19 = vmul.f32 0.7978846, %v379_v10  ;;  %v390_v20 = vmul.f32 0.7978846, %v380_v11  ;;  %v391_v23 = vmul.f32 0.7978846, %v381_v14  ;;  %v385_v30 = vadd.f32 %v375_v15, %v789_v57 }
  0x3f   : > { %v392_v24 = vmul.f32 0.7978846, %v382_v16  ;;  %v393_v26 = vmul.f32 0.7978846, %v383_v21  ;;  %v394_v29 = vmul.f32 0.7978846, %v384_v25  ;;  %v825_v33 = vadd.f32 %v762_v36, %v320_v28 }
  0x40   : > { %639 = vtanh.f32 %v389_v19  ;;  %v395_v34 = vmul.f32 0.7978846, %v385_v30  ;;  %v828_v37 = vadd.f32 %v762_v36, %v321_v31  ;;  %v386_v38 = vadd.f32 %v376_v32, %v803_v5 }
  0x41   : > { %641 = vtanh.f32 %v390_v20  ;;  %v357_v39 = vmul.f32 0.044715, %v825_v33  ;;  %v339_v52 = vmul.f32 0.5, %v766_v45  ;;  %v340_v55 = vmul.f32 0.5, %v769_v46 }
  0x42   : > { %643 = vtanh.f32 %v391_v23  ;;  %v358_v35 = vmul.f32 0.044715, %v828_v37  ;;  %v396_v40 = vmul.f32 0.7978846, %v386_v38  ;;  %v341_v60 = vmul.f32 0.5, %v772_v47 }
  0x43   : > { %645 = vtanh.f32 %v392_v24  ;;  %v367_v41 = vmul.f32 %v357_v39, %v825_v33  ;;  %v342_v63 = vmul.f32 0.5, %v775_v48  ;;  %v343_v45 = vmul.f32 0.5, %v778_v49 }
  0x44   : > { %647 = vtanh.f32 %v393_v26  ;;  %v368_v42 = vmul.f32 %v358_v35, %v828_v37  ;;  %v344_v4 = vmul.f32 0.5, %v781_v50  ;;  %v345_v49 = vmul.f32 0.5, %v789_v57 }
  0x45   : > { %649 = vtanh.f32 %v394_v29  ;;  %v377_v43 = vmul.f32 %v367_v41, %v825_v33  ;;  %v346_v16 = vmul.f32 0.5, %v803_v5  ;;  %v347_v25 = vmul.f32 0.5, %v825_v33 }
  0x46   : > { %651 = vtanh.f32 %v395_v34  ;;  %v378_v36 = vmul.f32 %v368_v42, %v828_v37  ;;  %v348_v26 = vmul.f32 0.5, %v828_v37 }
  0x47   : > { %653 = vtanh.f32 %v396_v40  ;;  %v387_v44 = vadd.f32 %v377_v43, %v825_v33 }
  0x48   : > { %v388_v51 = vadd.f32 %v378_v36, %v828_v37 }
  0x49   : > { %v397_v53 = vmul.f32 0.7978846, %v387_v44 }
  0x4a   : > { %v398_v56 = vmul.f32 0.7978846, %v388_v51 }
  0x4b   : > { %655 = vtanh.f32 %v397_v53 }
  0x4c   : > { %657 = vtanh.f32 %v398_v56 }
  0x4d   : > { %v640_v54 = vpop.eup %639 }
  0x4e   : > { %v642_v58 = vpop.eup %641  ;;  %v409_v59 = vadd.f32 1.0, %v640_v54 }
  0x4f   : > { %v644_v61 = vpop.eup %643  ;;  %v410_v62 = vadd.f32 1.0, %v642_v58 }
  0x50   : > { %v646_v0 = vpop.eup %645  ;;  %v419_v1 = vmul.f32 %v409_v59, %v339_v52  ;;  %v411_v2 = vadd.f32 1.0, %v644_v61 }
  0x51   : > { %v648_v3 = vpop.eup %647  ;;  %v420_v46 = vmul.f32 %v410_v62, %v340_v55  ;;  %v412_v47 = vadd.f32 1.0, %v646_v0 }
  0x52   : > { %v650_v48 = vpop.eup %649  ;;  %v600_v6 = vpack.c.bf16 %v419_v1, %v419_v1  ;;  %v421_v7 = vmul.f32 %v411_v2, %v341_v60  ;;  %v413_v8 = vadd.f32 1.0, %v648_v3 }
  0x53   : > { %v652_v9 = vpop.eup %651  ;;  %v601_v10 = vpack.c.bf16 %v420_v46, %v420_v46  ;;  %v422_v11 = vmul.f32 %v412_v47, %v342_v63  ;;  %v414_v12 = vadd.f32 1.0, %v650_v48 }
  0x54   : > { %470 = vst.msk [vmem:[%s848_s8] sm:$0xf] %vm469_vm0, %v600_v6  ;;  %v602_v13 = vpack.c.bf16 %v421_v7, %v421_v7  ;;  %v423_v14 = vmul.f32 %v413_v8, %v343_v45  ;;  %v415_v50 = vadd.f32 1.0, %v652_v9  ;;  %v654_v17 = vpop.eup %653 }
  0x55   : > { %471 = vst.msk [vmem:[%s848_s8 + $0x4] sm:$0xf] %vm469_vm0, %v601_v10  ;;  %v603_v18 = vpack.c.bf16 %v422_v11, %v422_v11  ;;  %v424_v57 = vmul.f32 %v414_v12, %v344_v4  ;;  %v416_v21 = vadd.f32 1.0, %v654_v17 }
  0x56   : > { %472 = vst.msk [vmem:[%s848_s8 + $0x8] sm:$0xf] %vm469_vm0, %v602_v13  ;;  %v604_v19 = vpack.c.bf16 %v423_v14, %v423_v14  ;;  %v425_v20 = vmul.f32 %v415_v50, %v345_v49 }
  0x57   : > { %473 = vst.msk [vmem:[%s848_s8 + $0xc] sm:$0xf] %vm469_vm0, %v603_v18  ;;  %v605_v22 = vpack.c.bf16 %v424_v57, %v424_v57  ;;  %v426_v24 = vmul.f32 %v416_v21, %v346_v16 }
  0x58   : > { %474 = vst.msk [vmem:[%s848_s8 + $0x10] sm:$0xf] %vm469_vm0, %v604_v19  ;;  %v606_v23 = vpack.c.bf16 %v425_v20, %v425_v20  ;;  %v656_v15 = vpop.eup %655 }
  0x59   : > { %475 = vst.msk [vmem:[%s848_s8 + $0x14] sm:$0xf] %vm469_vm0, %v605_v22  ;;  %v607_v5 = vpack.c.bf16 %v426_v24, %v426_v24  ;;  %v658_v27 = vpop.eup %657  ;;  %v417_v28 = vadd.f32 1.0, %v656_v15 }
  0x5a   : > { %476 = vst.msk [vmem:[%s848_s8 + $0x18] sm:$0xf] %vm469_vm0, %v606_v23  ;;  %v418_v29 = vadd.f32 1.0, %v658_v27 }
  0x5b   : > { %477 = vst.msk [vmem:[%s848_s8 + $0x1c] sm:$0xf] %vm469_vm0, %v607_v5  ;;  %v427_v30 = vmul.f32 %v417_v28, %v347_v25 }
  0x5c   : > { %v428_v31 = vmul.f32 %v418_v29, %v348_v26 }
  0x5d   : > { %v608_v32 = vpack.c.bf16 %v427_v30, %v427_v30 }
  0x5e   : > { %v609_v34 = vpack.c.bf16 %v428_v31, %v428_v31 }
  0x5f   : > { %478 = vst.msk [vmem:[%s848_s8 + $0x20] sm:$0xf] %vm469_vm0, %v608_v32 }
  0x60   : > { %479 = vst.msk [vmem:[%s848_s8 + $0x24] sm:$0xf] %vm469_vm0, %v609_v34 }
  0x61 PF: > { %s14_s17 = sadd.s32 1, %s681_s17   ;;  %s889_s15 = smov %s677_s16 }
  0x62   : > { %p11_p5 = scmp.ge.s32.totalorder %s14_s17, 4   ;;  %s890_s16 = smov %s892_s18 }
  0x64   :  { %13 = sbr.rel (!%p11_p5) target bundleno = 2 (0x2), region = 69 }

// kernel: fwd.4
= control target key start
LH: loop header
LB: loop body
LE: loop exit
PB: predicated region body
PF: predicated region fallthrough
CT: control target
= control target key end

     0   :  { %s1091_s15 = smov 0   ;;  %s1093_s16 = smov 0   ;;  %s1232_s0 = inlined_call_operand.vmem [shape: f32[2,88,5], index: 0, kind: input, shape index: {}, may-alias: {0,1}]   ;;  %s1233_s1 = inlined_call_operand.vmem [shape: f32[2,88,5], index: 1, kind: input, shape index: {}, may-alias: {0,1}]   ;;  %s1234_s2 = inlined_call_operand.vmem [shape: f32[2,5,32], index: 2, kind: input, shape index: {}]   ;;  %s1235_s3 = inlined_call_operand.vmem [shape: f32[2,80,32], index: 3, kind: output, shape index: {0}]   ;;  %s1236_s4 = inlined_call_operand.vmem [shape: f32[2,2,32], index: 4, kind: output, shape index: {1}]  }
   0x1   :  { %s1095_s17 = smov 0  }
   0x2 LB: > { %s27_s18 = sadd.s32 1, %s1059_s16  ;;  %p924_p0 = scmp.ge.s32.totalorder %s1063_s17, 1  ;;  %s1063_s17 = sphi %s1095_s17, %s15_s17   ;;  %s1059_s16 = sphi %s1093_s16, %s1238_s16   ;;  %s1055_s15 = sphi %s1091_s15, %s1237_s15  }
   0x3   : > { %p29_p1 = scmp.ge.s32.totalorder %s27_s18, 2  ;;  %p217_p2 = scmp.lt.s32.totalorder %s1063_s17, 3 }
   0x5   : > { %s1240_s18 = smov (%p29_p1, %s27_s18), 0  ;;  %p218_p3 = pnand %p924_p0, %p217_p2 }
   0x6   : > { %p274_p4 = scmp.lt.s32.totalorder (!%p218_p3), %s1055_s15, 1 }
   0x7   : > { %221 = sbr.rel (%p218_p3) target bundleno = 259 (0x103), region = 32 }
   0xc   : > { %v324_v0 = vld [vmem:[%s1234_s2] sm:$0x1f]  ;;  %vm381_vm0 = vcmask 1044480   ;;  %v929_v1 = vld [vmem:[%s1234_s2 + $0x8] sm:$0x1f]  ;;  %s1242_s15 = smov (!%p274_p4, %s1055_s15), 1 }
   0xd   : > { %995 = vmatprep.subr.msk.mxu1 %vm381_vm0, %v324_v0  ;;  %978 = vmatprep.subr.msk.mxu0 %vm381_vm0, %v929_v1  ;;  %s1012_s23 = smul.u32 88, %s1242_s15  ;;  %vm360_vm1 = vcmask 39936   ;;  %vm338_vm2 = vcmask 1046528   ;;  %s928_s5 = sshll.u32 %s1242_s15, 1  ;;  %vm778_vm3 = vcmask 254976   ;;  %v1065_v34 = vmov 0.0  }
   0xe   : > { %996 = vmatpush3.msk.msra.mxu1 %vm381_vm0, %v324_v0  ;;  %979 = vmatpush3.msk.msra.mxu0 %vm381_vm0, %v929_v1  ;;  %s1170_s8 = scalar_lea.vmem %s1236_s4, %s928_s5  ;;  %s1014_s9 = smul.u32 80, %s1242_s15  ;;  %vm638_vm4 = vcmask 261120   ;;  %vm772_vm5 = vcmask 1040384  }
   0xf   : > { %s1121_s26 = scalar_lea.vmem %s1232_s0, %s1012_s23  ;;  %s955_s27 = sadd.s32 80, %s1012_s23  ;;  %779 = vst.msk [vmem:[%s1170_s8] sm:$0x3] %vm778_vm3, %v1065_v34 }
  0x10   : > { %v313_v2 = vld [vmem:[%s1121_s26] sm:$0xff]  ;;  %v314_v3 = vld [vmem:[%s1121_s26 + $0x8] sm:$0xff]  ;;  %v315_v4 = vld [vmem:[%s1121_s26 + $0x10] sm:$0xff]  ;;  %s296_s30 = scalar_lea.vmem %s1233_s1, %s955_s27  ;;  %s1178_s12 = scalar_lea.vmem %s1235_s3, %s1014_s9 }
  0x11   : > { %v339_v5 = vrot.slane %v313_v2, 1  ;;  %997 = vmatprep.mubr.msk.f32.mxu1 %vm360_vm1, %v313_v2  ;;  %v340_v6 = vrot.slane %v314_v3, 1  ;;  %v342_v7 = vrot.slane %v315_v4, 1  ;;  %v316_v8 = vld [vmem:[%s1121_s26 + $0x18] sm:$0xff]  ;;  %v317_v9 = vld [vmem:[%s1121_s26 + $0x20] sm:$0xff]  ;;  %v318_v10 = vld [vmem:[%s1121_s26 + $0x28] sm:$0xff] }
  0x12   : > { %998 = vmatmul.mubr.msk.f32.vlgmr.msra.gmra.mxu1 %vm360_vm1, %v314_v3  ;;  %v344_v11 = vrot.slane %v316_v8, 1  ;;  %v346_v12 = vrot.slane %v317_v9, 1  ;;  %v348_v15 = vrot.slane %v318_v10, 1  ;;  %v319_v16 = vld [vmem:[%s1121_s26 + $0x30] sm:$0xff]  ;;  %v320_v18 = vld [vmem:[%s1121_s26 + $0x38] sm:$0xff]  ;;  %v321_v23 = vld [vmem:[%s1121_s26 + $0x40] sm:$0xff] }
  0x13   : > { %v341_v13 = vsel %vm338_vm2, %v339_v5, %v340_v6  ;;  %v343_v14 = vsel %vm338_vm2, %v340_v6, %v342_v7  ;;  %1000 = vmatprep.mubr.msk.f32.mxu1 %vm360_vm1, %v315_v4  ;;  %v350_v20 = vrot.slane %v319_v16, 1  ;;  %v352_v22 = vrot.slane %v320_v18, 1  ;;  %v322_v24 = vld [vmem:[%s1121_s26 + $0x48] sm:$0xff]  ;;  %v323_v29 = vld [vmem:[%s296_s30] sm:$0xff] }
  0x14   : > { %980 = vmatprep.mubr.msk.f32.mxu0 %vm360_vm1, %v341_v13  ;;  %v345_v17 = vsel %vm338_vm2, %v342_v7, %v344_v11  ;;  %v347_v19 = vsel %vm338_vm2, %v344_v11, %v346_v12  ;;  %v349_v21 = vsel %vm338_vm2, %v346_v12, %v348_v15  ;;  %v354_v26 = vrot.slane %v321_v23, 1 }
  0x15   : > { %981 = vmatmul.mubr.msk.f32.vlgmr.msra.gmra.mxu0 %vm360_vm1, %v343_v14  ;;  %v351_v25 = vsel %vm338_vm2, %v348_v15, %v350_v20  ;;  %v353_v27 = vsel %vm338_vm2, %v350_v20, %v352_v22  ;;  %v356_v28 = vrot.slane %v322_v24, 1  ;;  %v358_v31 = vrot.slane %v323_v29, 1 }
  0x16   : > { %1001 = vmatmul.mubr.msk.f32.gmra.mxu1 %vm360_vm1, %v316_v8  ;;  %983 = vmatprep.mubr.msk.f32.mxu0 %vm360_vm1, %v345_v17  ;;  %v355_v30 = vsel %vm338_vm2, %v352_v22, %v354_v26 }
  0x17   : > { %1003 = vmatprep.mubr.msk.f32.mxu1 %vm360_vm1, %v317_v9  ;;  %v357_v32 = vsel %vm338_vm2, %v354_v26, %v356_v28  ;;  %v359_v33 = vsel %vm338_vm2, %v356_v28, %v358_v31 }
  0x19   : > { %984 = vmatmul.mubr.msk.f32.gmra.mxu0 %vm360_vm1, %v347_v19 }
  0x1a   : > { %1004 = vmatmul.mubr.msk.f32.gmra.mxu1 %vm360_vm1, %v318_v10  ;;  %986 = vmatprep.mubr.msk.f32.mxu0 %vm360_vm1, %v349_v21 }
  0x1b   : > { %1006 = vmatprep.mubr.msk.f32.mxu1 %vm360_vm1, %v319_v16 }
  0x1d   : > { %987 = vmatmul.mubr.msk.f32.gmra.mxu0 %vm360_vm1, %v351_v25 }
  0x1e   : > { %1007 = vmatmul.mubr.msk.f32.gmra.mxu1 %vm360_vm1, %v320_v18  ;;  %989 = vmatprep.mubr.msk.f32.mxu0 %vm360_vm1, %v353_v27 }
  0x1f   : > { %1009 = vmatprep.mubr.msk.f32.mxu1 %vm360_vm1, %v321_v23 }
  0x21   : > { %990 = vmatmul.mubr.msk.f32.gmra.mxu0 %vm360_vm1, %v355_v30 }
  0x22   : > { %1010 = vmatmul.mubr.msk.f32.gmra.mxu1 %vm360_vm1, %v322_v24  ;;  %992 = vmatprep.mubr.msk.f32.mxu0 %vm360_vm1, %v357_v32 }
  0x25   : > { %993 = vmatmul.mubr.msk.f32.gmra.mxu0 %vm360_vm1, %v359_v33 }
  0xd2   : > { %v999_v35 = vpop.f32.mrf.mxu1 }
  0xd4   : > { %v589_v36 = vpop.f32.mrf.mxu1 }
  0xd5   : > { %v982_v37 = vpop.f32.mrf.mxu0 }
  0xd6   : > { %v595_v38 = vadd.f32 %v999_v35, %v982_v37  ;;  %v1002_v39 = vpop.f32.mrf.mxu1 }
  0xd7   : > { %v451_v40 = vpop.f32.mrf.mxu0 }
  0xd8   : > { %640 = vst.msk [vmem:[%s1178_s12 + $0x8] sm:$0xff] %vm638_vm4, %v595_v38  ;;  %v590_v41 = vadd.f32 %v589_v36, %v451_v40  ;;  %v599_v42 = vpop.f32.mrf.mxu1  ;;  %v738_v44 = vmul.f32 %v595_v38, %v595_v38  ;;  %v713_v50 = vsel %vm638_vm4, %v595_v38, 0.0 }
  0xd9   : > { %v985_v43 = vpop.f32.mrf.mxu0 }
  0xda   : > { %639 = vst.msk [vmem:[%s1178_s12] sm:$0xff] %vm638_vm4, %v590_v41  ;;  %v712_v45 = vsel %vm638_vm4, %v590_v41, 0.0  ;;  %v737_v46 = vmul.f32 %v590_v41, %v590_v41  ;;  %v605_v47 = vadd.f32 %v1002_v39, %v985_v43  ;;  %v1005_v48 = vpop.f32.mrf.mxu1  ;;  %v748_v57 = vsel %vm638_vm4, %v738_v44, 0.0 }
  0xdb   : > { %v461_v49 = vpop.f32.mrf.mxu0  ;;  %v714_v55 = vadd.f32 %v713_v50, %v712_v45 }
  0xdc   : > { %v747_v51 = vsel %vm638_vm4, %v737_v46, 0.0  ;;  %642 = vst.msk [vmem:[%s1178_s12 + $0x18] sm:$0xff] %vm638_vm4, %v605_v47  ;;  %v705_v52 = vmul.f32 0.0, %v605_v47  ;;  %v600_v53 = vadd.f32 %v599_v42, %v461_v49  ;;  %v609_v54 = vpop.f32.mrf.mxu1 }
  0xdd   : > { %v988_v56 = vpop.f32.mrf.mxu0  ;;  %v749_v61 = vadd.f32 %v748_v57, %v747_v51 }
  0xde   : > { %641 = vst.msk [vmem:[%s1178_s12 + $0x10] sm:$0xff] %vm638_vm4, %v600_v53  ;;  %v715_v58 = vsel %vm638_vm4, %v600_v53, 0.0  ;;  %v739_v59 = vmul.f32 %v600_v53, %v600_v53  ;;  %v1008_v60 = vpop.f32.mrf.mxu1  ;;  %v740_v62 = vmul.f32 %v705_v52, %v705_v52  ;;  %v615_v0 = vadd.f32 %v1005_v48, %v988_v56 }
  0xdf   : > { %v716_v63 = vadd.f32 %v715_v58, %v714_v55  ;;  %v471_v1 = vpop.f32.mrf.mxu0  ;;  %v717_v8 = vsel %vm638_vm4, %v705_v52, 0.0 }
  0xe0   : > { %v750_v2 = vsel %vm638_vm4, %v739_v59, 0.0  ;;  %v610_v3 = vadd.f32 %v609_v54, %v471_v1  ;;  %v619_v4 = vpop.f32.mrf.mxu1  ;;  %644 = vst.msk [vmem:[%s1178_s12 + $0x28] sm:$0xff] %vm638_vm4, %v615_v0  ;;  %v707_v6 = vmul.f32 0.0, %v615_v0  ;;  %v752_v11 = vsel %vm638_vm4, %v740_v62, 0.0 }
  0xe1   : > { %v751_v5 = vadd.f32 %v750_v2, %v749_v61  ;;  %v991_v7 = vpop.f32.mrf.mxu0  ;;  %v718_v13 = vadd.f32 %v717_v8, %v716_v63 }
  0xe2   : > { %643 = vst.msk [vmem:[%s1178_s12 + $0x20] sm:$0xff] %vm638_vm4, %v610_v3  ;;  %v706_v9 = vmul.f32 0.0, %v610_v3  ;;  %v625_v10 = vadd.f32 %v1008_v60, %v991_v7  ;;  %v742_v12 = vmul.f32 %v707_v6, %v707_v6  ;;  %v1011_v15 = vpop.f32.mrf.mxu1  ;;  %v721_v23 = vsel %vm638_vm4, %v707_v6, 0.0 }
  0xe3   : > { %v481_v14 = vpop.f32.mrf.mxu0  ;;  %v753_v21 = vadd.f32 %v752_v11, %v751_v5 }
  0xe4   : > { %v719_v16 = vsel %vm638_vm4, %v706_v9, 0.0  ;;  %v741_v17 = vmul.f32 %v706_v9, %v706_v9  ;;  %646 = vst.msk [vmem:[%s1178_s12 + $0x38] sm:$0xff] %vm638_vm4, %v625_v10  ;;  %v709_v18 = vmul.f32 0.0, %v625_v10  ;;  %v620_v19 = vadd.f32 %v619_v4, %v481_v14  ;;  %v629_v30 = vpop.f32.mrf.mxu1  ;;  %v780_v4 = vld [vmem:[%s1170_s8] sm:$0x3] }
  0xe5   : > { %v720_v20 = vadd.f32 %v719_v16, %v718_v13  ;;  %v994_v22 = vpop.f32.mrf.mxu0  ;;  %v756_v26 = vsel %vm638_vm4, %v742_v12, 0.0 }
  0xe6   : > { %v754_v24 = vsel %vm638_vm4, %v741_v17, 0.0  ;;  %645 = vst.msk [vmem:[%s1178_s12 + $0x30] sm:$0xff] %vm638_vm4, %v620_v19  ;;  %v708_v25 = vmul.f32 0.0, %v620_v19  ;;  %v635_v29 = vadd.f32 %v1011_v15, %v994_v22  ;;  %v744_v32 = vmul.f32 %v709_v18, %v709_v18 }
  0xe7   : > { %v755_v27 = vadd.f32 %v754_v24, %v753_v21  ;;  %v722_v28 = vadd.f32 %v721_v23, %v720_v20  ;;  %v491_v31 = vpop.f32.mrf.mxu0  ;;  %v725_v39 = vsel %vm638_vm4, %v709_v18, 0.0 }
  0xe8   : > { %v723_v33 = vsel %vm638_vm4, %v708_v25, 0.0  ;;  %v743_v34 = vmul.f32 %v708_v25, %v708_v25  ;;  %v630_v35 = vadd.f32 %v629_v30, %v491_v31  ;;  %648 = vst.msk [vmem:[%s1178_s12 + $0x48] sm:$0xff] %vm638_vm4, %v635_v29  ;;  %v711_v38 = vmul.f32 0.0, %v635_v29 }
  0xe9   : > { %v724_v36 = vadd.f32 %v723_v33, %v722_v28  ;;  %v757_v37 = vadd.f32 %v756_v26, %v755_v27  ;;  %v760_v44 = vsel %vm638_vm4, %v744_v32, 0.0 }
  0xea   : > { %v758_v40 = vsel %vm638_vm4, %v743_v34, 0.0  ;;  %647 = vst.msk [vmem:[%s1178_s12 + $0x40] sm:$0xff] %vm638_vm4, %v630_v35  ;;  %v710_v41 = vmul.f32 0.0, %v630_v35  ;;  %v746_v45 = vmul.f32 %v711_v38, %v711_v38  ;;  %v729_v50 = vsel %vm638_vm4, %v711_v38, 0.0 }
  0xeb   : > { %v759_v42 = vadd.f32 %v758_v40, %v757_v37  ;;  %v726_v43 = vadd.f32 %v725_v39, %v724_v36 }
  0xec   : > { %v727_v46 = vsel %vm638_vm4, %v710_v41, 0.0  ;;  %v745_v47 = vmul.f32 %v710_v41, %v710_v41  ;;  %v764_v54 = vsel %vm638_vm4, %v746_v45, 0.0 }
  0xed   : > { %v728_v48 = vadd.f32 %v727_v46, %v726_v43  ;;  %v761_v49 = vadd.f32 %v760_v44, %v759_v42 }
  0xee   : > { %v762_v51 = vsel %vm638_vm4, %v745_v47, 0.0 }
  0xef   : > { %v730_v52 = vadd.f32 %v729_v50, %v728_v48  ;;  %v763_v53 = vadd.f32 %v762_v51, %v761_v49 }
  0xf1   : > { %v731_v55 = vrot.slane %v730_v52, 4  ;;  %v765_v56 = vadd.f32 %v764_v54, %v763_v53 }
  0xf3   : > { %v732_v57 = vadd.f32 %v731_v55, %v730_v52  ;;  %v766_v58 = vrot.slane %v765_v56, 4 }
  0xf5   : > { %v733_v59 = vrot.slane %v732_v57, 2  ;;  %v767_v60 = vadd.f32 %v766_v58, %v765_v56 }
  0xf7   : > { %v734_v61 = vadd.f32 %v733_v59, %v732_v57  ;;  %v768_v62 = vrot.slane %v767_v60, 2 }
  0xf9   : > { %v735_v63 = vrot.slane %v734_v61, 1  ;;  %v769_v0 = vadd.f32 %v768_v62, %v767_v60 }
  0xfb   : > { %v770_v1 = vrot.slane %v769_v0, 1  ;;  %v736_v2 = vadd.f32 %v735_v63, %v734_v61 }
  0xfd   : > { %v771_v3 = vadd.f32 %v770_v1, %v769_v0 }
  0xff   : > { %v773_v5 = vsel %vm772_vm5, %v736_v2, %v771_v3 }
 0x100   : > { %v781_v6 = vadd.f32 %v780_v4, %v773_v5 }
 0x102   : > { %783 = vst.msk [vmem:[%s1170_s8] sm:$0x3] %vm778_vm3, %v781_v6 }
 0x103 PF: > { %s15_s17 = sadd.s32 1, %s1063_s17   ;;  %s1237_s15 = smov %s1059_s16 }
 0x104   : > { %p12_p5 = scmp.ge.s32.totalorder %s15_s17, 4   ;;  %s1238_s16 = smov %s1240_s18 }
 0x106   :  { %14 = sbr.rel (!%p12_p5) target bundleno = 2 (0x2), region = 82 }

// kernel: fwd.6
= control target key start
LH: loop header
LB: loop body
LE: loop exit
PB: predicated region body
PF: predicated region fallthrough
CT: control target
= control target key end

     0   :  { %s832_s15 = smov 0   ;;  %s834_s16 = smov 0   ;;  %s899_s0 = inlined_call_operand.vmem [shape: bf16[2,40,64], index: 0, kind: input, shape index: {}, may-alias: {0,1}]   ;;  %s900_s1 = inlined_call_operand.vmem [shape: bf16[2,40,64], index: 1, kind: input, shape index: {}, may-alias: {0,1}]   ;;  %s901_s2 = inlined_call_operand.vmem [shape: bf16[2,64,32], index: 2, kind: input, shape index: {}]   ;;  %s902_s3 = inlined_call_operand.vmem [shape: f32[1,32], index: 3, kind: input, shape index: {}]   ;;  %s903_s4 = inlined_call_operand.vmem [shape: bf16[2,32,32], index: 4, kind: output, shape index: {}]  }
   0x1   :  { %s836_s17 = smov 0  }
   0x2 LB: > { %s26_s18 = sadd.s32 1, %s801_s16  ;;  %p675_p0 = scmp.ge.s32.totalorder %s805_s17, 1  ;;  %s805_s17 = sphi %s836_s17, %s14_s17   ;;  %s801_s16 = sphi %s834_s16, %s905_s16   ;;  %s797_s15 = sphi %s832_s15, %s904_s15  }
   0x3   : > { %p28_p1 = scmp.ge.s32.totalorder %s26_s18, 2  ;;  %p214_p2 = scmp.lt.s32.totalorder %s805_s17, 3 }
   0x5   : > { %s907_s18 = smov (%p28_p1, %s26_s18), 0  ;;  %p215_p3 = pnand %p675_p0, %p214_p2 }
   0x6   : > { %p267_p4 = scmp.lt.s32.totalorder (!%p215_p3), %s797_s15, 1 }
   0x7   : > { %218 = sbr.rel (%p215_p3) target bundleno = 263 (0x107), region = 36 }
   0xc   : > { %v767_v0 = vld [vmem:[%s901_s2 + $0x18] sm:$0xff]   ;;  %v768_v1 = vld [vmem:[%s901_s2 + $0x10] sm:$0xff]   ;;  %v769_v2 = vld [vmem:[%s901_s2 + $0x28] sm:$0xff]   ;;  %s909_s15 = smov (!%p267_p4, %s797_s15), 1  ;;  %vm444_vm0 = vcmask 523264   ;;  %vm364_vm2 = vcmask 261120  }
   0xd   : > { %728 = vmatprep.subr.bf16.mxu1 %v767_v0  ;;  %v770_v3 = vld [vmem:[%s901_s2 + $0x8] sm:$0xff]   ;;  %720 = vmatprep.subr.bf16.mxu0 %v769_v2  ;;  %v771_v4 = vld [vmem:[%s901_s2 + $0x20] sm:$0xff]   ;;  %s740_s29 = smul.u32 20, %s909_s15  ;;  %vm331_vm1 = vsmask.f32 7424  ;;  %s705_s19 = sshll.u32 %s909_s15, 4 }
   0xe   : > { %729 = vmatpush3.bf16.msra.mxu1 %v767_v0  ;;  %721 = vmatpush3.bf16.msra.mxu0 %v769_v2  ;;  %v772_v5 = vld [vmem:[%s901_s2] sm:$0xff]   ;;  %s300_s22 = scalar_lea.vmem %s903_s4, %s705_s19  ;;  %vm561_vm3 = vcmask 257024  }
   0xf   : > { %730 = vmatprep.subr.bf16.mxu1 %v768_v1  ;;  %722 = vmatprep.subr.bf16.mxu0 %v771_v4  ;;  %s274_s8 = scalar_lea.vmem %s899_s0, %s740_s29  ;;  %s704_s9 = sadd.s32 16, %s740_s29  ;;  %v696_v23 = vld [vmem:[%s902_s3] ss:$0 sm:$0xff] }
  0x10   : > { %v773_v6 = vld [vmem:[%s274_s8] sm:$0xff]   ;;  %v774_v7 = vld [vmem:[%s274_s8 + $0x8] sm:$0xff]   ;;  %s289_s12 = scalar_lea.vmem %s900_s1, %s704_s9 }
  0x11   : > { %v333_v8 = vshrl.u32 %v773_v6, 16  ;;  %v335_v9 = vshll.u32 %v773_v6, 16  ;;  %v340_v10 = vshll.u32 %v774_v7, 16  ;;  %v344_v11 = vshrl.u32 %v774_v7, 16  ;;  %v307_v12 = vld [vmem:[%s289_s12] sm:$0xf]  ;;  %736 = vmatprep.mubr.msk.bf16.mxu1 %vm444_vm0, %v773_v6 }
  0x12   : > { %731 = vmatpush3.bf16.msra.mxu1 %v768_v1  ;;  %723 = vmatpush3.bf16.msra.mxu0 %v771_v4  ;;  %v348_v13 = vshll.u32 %v307_v12, 16 }
  0x13   : > { %732 = vmatprep.subr.bf16.mxu1 %v770_v3  ;;  %v337_v14 = vrot.slane %v335_v9, 1  ;;  %v342_v15 = vrot.slane %v340_v10, 1 }
  0x14   : > { %v350_v16 = vrot.slane %v348_v13, 1 }
  0x15   : > { %v338_v17 = vor.u32 %v337_v14, %v333_v8  ;;  %v346_v18 = vor.u32 %v344_v11, %v342_v15 }
  0x16   : > { %733 = vmatpush3.bf16.msra.mxu1 %v770_v3 }
  0x17   : > { %734 = vmatprep.subr.bf16.mxu1 %v772_v5  ;;  %v343_v19 = vsel %vm331_vm1, %v338_v17, %v342_v15  ;;  %v351_v20 = vsel %vm331_vm1, %v346_v18, %v350_v16 }
  0x18   : > { %724 = vmatprep.mubr.msk.bf16.mxu0 %vm364_vm2, %v343_v19 }
  0x19   : > { %725 = vmatmul.mubr.msk.bf16.vlgmr.msra.gmra.mxu0 %vm364_vm2, %v351_v20 }
  0x1a   : > { %735 = vmatpush3.bf16.msra.mxu1 %v772_v5 }
  0x1d   : > { %737 = vmatmul.mubr.msk.bf16.vlgmr.msra.gmra.mxu1 %vm444_vm0, %v774_v7 }
  0xd9   : > { %v726_v21 = vpop.f32.mrf.mxu0 }
  0xdb   : > { %v405_v25 = vpop.f32.mrf.mxu0 }
  0xdd   : > { %v738_v22 = vpop.f32.mrf.mxu1  ;;  %v727_v29 = vpop.f32.mrf.mxu0 }
  0xde   : > { %v492_v24 = vadd.f32 %v738_v22, %v726_v21 }
  0xdf   : > { %v483_v26 = vpop.f32.mrf.mxu1  ;;  %v408_v34 = vpop.f32.mrf.mxu0 }
  0xe0   : > { %v507_v27 = vadd.f32 %v696_v23, %v492_v24  ;;  %v484_v28 = vadd.f32 %v483_v26, %v405_v25 }
  0xe1   : > { %v739_v30 = vpop.f32.mrf.mxu1 }
  0xe2   : > { %v515_v31 = vmul.f32 0.044715, %v507_v27  ;;  %v505_v32 = vadd.f32 %v696_v23, %v484_v28  ;;  %v495_v33 = vadd.f32 %v739_v30, %v727_v29  ;;  %v511_v59 = vmul.f32 0.5, %v507_v27 }
  0xe3   : > { %v486_v35 = vpop.f32.mrf.mxu1 }
  0xe4   : > { %v519_v36 = vmul.f32 %v515_v31, %v507_v27  ;;  %v513_v37 = vmul.f32 0.044715, %v505_v32  ;;  %v508_v38 = vadd.f32 %v696_v23, %v495_v33  ;;  %v487_v39 = vadd.f32 %v486_v35, %v408_v34 }
  0xe5   : > { %v509_v63 = vmul.f32 0.5, %v505_v32 }
  0xe6   : > { %v523_v40 = vmul.f32 %v519_v36, %v507_v27  ;;  %v517_v41 = vmul.f32 %v513_v37, %v505_v32  ;;  %v516_v42 = vmul.f32 0.044715, %v508_v38  ;;  %v506_v43 = vadd.f32 %v696_v23, %v487_v39 }
  0xe7   : > { %v512_v4 = vmul.f32 0.5, %v508_v38 }
  0xe8   : > { %v527_v44 = vadd.f32 %v523_v40, %v507_v27  ;;  %v521_v45 = vmul.f32 %v517_v41, %v505_v32  ;;  %v520_v46 = vmul.f32 %v516_v42, %v508_v38  ;;  %v514_v47 = vmul.f32 0.044715, %v506_v43 }
  0xe9   : > { %v510_v9 = vmul.f32 0.5, %v506_v43 }
  0xea   : > { %v531_v48 = vmul.f32 0.7978846, %v527_v44  ;;  %v525_v49 = vadd.f32 %v521_v45, %v505_v32  ;;  %v524_v50 = vmul.f32 %v520_v46, %v508_v38  ;;  %v518_v51 = vmul.f32 %v514_v47, %v506_v43 }
  0xec   : > { %775 = vtanh.f32 %v531_v48  ;;  %v529_v52 = vmul.f32 0.7978846, %v525_v49  ;;  %v528_v53 = vadd.f32 %v524_v50, %v508_v38  ;;  %v522_v54 = vmul.f32 %v518_v51, %v506_v43 }
  0xee   : > { %777 = vtanh.f32 %v529_v52  ;;  %v532_v55 = vmul.f32 0.7978846, %v528_v53  ;;  %v526_v56 = vadd.f32 %v522_v54, %v506_v43 }
  0xf0   : > { %779 = vtanh.f32 %v532_v55  ;;  %v530_v57 = vmul.f32 0.7978846, %v526_v56 }
  0xf2   : > { %781 = vtanh.f32 %v530_v57 }
  0xf9   : > { %v776_v58 = vpop.eup %775 }
  0xfa   : > { %v539_v60 = vadd.f32 1.0, %v776_v58 }
  0xfb   : > { %v778_v61 = vpop.eup %777 }
  0xfc   : > { %v543_v62 = vmul.f32 %v539_v60, %v511_v59  ;;  %v537_v0 = vadd.f32 1.0, %v778_v61 }
  0xfd   : > { %v780_v1 = vpop.eup %779 }
  0xfe   : > { %v708_v2 = vpack.c.bf16 %v543_v62, %v543_v62  ;;  %v541_v3 = vmul.f32 %v537_v0, %v509_v63  ;;  %v540_v5 = vadd.f32 1.0, %v780_v1 }
  0xff   : > { %v782_v6 = vpop.eup %781 }
 0x100   : > { %564 = vst.msk [vmem:[%s300_s22 + $0x8] sm:$0xf] %vm561_vm3, %v708_v2  ;;  %v706_v7 = vpack.c.bf16 %v541_v3, %v541_v3  ;;  %v544_v8 = vmul.f32 %v540_v5, %v512_v4  ;;  %v538_v10 = vadd.f32 1.0, %v782_v6 }
 0x102   : > { %562 = vst.msk [vmem:[%s300_s22] sm:$0xf] %vm561_vm3, %v706_v7  ;;  %v709_v11 = vpack.c.bf16 %v544_v8, %v544_v8  ;;  %v542_v12 = vmul.f32 %v538_v10, %v510_v9 }
 0x104   : > { %565 = vst.msk [vmem:[%s300_s22 + $0xc] sm:$0xf] %vm561_vm3, %v709_v11  ;;  %v707_v13 = vpack.c.bf16 %v542_v12, %v542_v12 }
 0x106   : > { %563 = vst.msk [vmem:[%s300_s22 + $0x4] sm:$0xf] %vm561_vm3, %v707_v13 }
 0x107 PF: > { %s14_s17 = sadd.s32 1, %s805_s17   ;;  %s904_s15 = smov %s801_s16 }
 0x108   : > { %p11_p5 = scmp.ge.s32.totalorder %s14_s17, 4   ;;  %s905_s16 = smov %s907_s18 }
 0x10a   :  { %13 = sbr.rel (!%p11_p5) target bundleno = 2 (0x2), region = 70 }

// kernel: fwd.7
= control target key start
LH: loop header
LB: loop body
LE: loop exit
PB: predicated region body
PF: predicated region fallthrough
CT: control target
= control target key end

     0   :  { %s674_s15 = smov 0   ;;  %s676_s16 = smov 0   ;;  %s738_s0 = inlined_call_operand.vmem [shape: bf16[2,16,64], index: 0, kind: input, shape index: {}, may-alias: {0,1}]   ;;  %s739_s1 = inlined_call_operand.vmem [shape: bf16[2,16,64], index: 1, kind: input, shape index: {}, may-alias: {0,1}]   ;;  %s740_s2 = inlined_call_operand.vmem [shape: bf16[2,64,32], index: 2, kind: input, shape index: {}]   ;;  %s741_s3 = inlined_call_operand.vmem [shape: f32[1,32], index: 3, kind: input, shape index: {}]   ;;  %s742_s4 = inlined_call_operand.vmem [shape: f32[2,8,32], index: 4, kind: output, shape index: {}]  }
   0x1   :  { %s678_s17 = smov 0  }
   0x2 LB: > { %s26_s18 = sadd.s32 1, %s641_s16  ;;  %p534_p0 = scmp.ge.s32.totalorder %s645_s17, 1  ;;  %s645_s17 = sphi %s678_s17, %s14_s17   ;;  %s641_s16 = sphi %s676_s16, %s744_s16   ;;  %s637_s15 = sphi %s674_s15, %s743_s15  }
   0x3   : > { %p28_p1 = scmp.ge.s32.totalorder %s26_s18, 2  ;;  %p200_p2 = scmp.lt.s32.totalorder %s645_s17, 3 }
   0x5   : > { %s746_s18 = smov (%p28_p1, %s26_s18), 0  ;;  %p201_p3 = pnand %p534_p0, %p200_p2 }
   0x6   : > { %p240_p4 = scmp.lt.s32.totalorder (!%p201_p3), %s637_s15, 1 }
   0x7   : > { %204 = sbr.rel (%p201_p3) target bundleno = 255 (0xff), region = 36 }
   0xc   : > { %v614_v0 = vld [vmem:[%s740_s2 + $0x18] sm:$0xff]   ;;  %v647_v1 = vmov 0.0   ;;  %v615_v2 = vld [vmem:[%s740_s2 + $0x10] sm:$0xff]   ;;  %v616_v3 = vld [vmem:[%s740_s2 + $0x28] sm:$0xff]   ;;  %vm648_vm0 = vmmov 0   ;;  %s748_s15 = smov (!%p240_p4, %s637_s15), 1 }
   0xd   : > { %576 = vmatprep.subr.bf16.mxu1 %v647_v1  ;;  %568 = vmatprep.subr.bf16.mxu0 %v647_v1  ;;  %v618_v4 = vld [vmem:[%s740_s2 + $0x20] sm:$0xff]   ;;  %v617_v5 = vld [vmem:[%s740_s2 + $0x8] sm:$0xff]   ;;  %s707_s29 = sshll.u32 %s748_s15, 3  ;;  %vm271_vm1 = vcmask 1043456   ;;  %vm374_vm2 = vcmask 523264   ;;  %vm306_vm3 = vcmask 261120  }
   0xe   : > { %577 = vmatpush3.bf16.msra.mxu1 %v614_v0  ;;  %572 = vmatprep.mubr.msk.bf16.mxu0 %vm648_vm0, %v647_v1  ;;  %s247_s6 = scalar_lea.vmem %s738_s0, %s707_s29  ;;  %s558_s7 = sadd.s32 4, %s707_s29  ;;  %v619_v8 = vld [vmem:[%s740_s2] sm:$0xff]  }
   0xf   : > { %578 = vmatprep.subr.bf16.mxu1 %v647_v1  ;;  %584 = vmatprep.mubr.msk.bf16.mxu1 %vm648_vm0, %v647_v1  ;;  %s256_s10 = scalar_lea.vmem %s739_s1, %s558_s7  ;;  %v266_v6 = vld [vmem:[%s247_s6] sm:$0xf]  ;;  %s264_s20 = scalar_lea.vmem %s742_s4, %s707_s29 }
  0x10   : > { %569 = vmatpush3.bf16.msra.mxu0 %v616_v3  ;;  %v620_v7 = vld [vmem:[%s256_s10] ss:$0 sps:$4 sm:$0xff]  }
  0x11   : > { %570 = vmatprep.subr.bf16.mxu0 %v647_v1  ;;  %v274_v9 = vsel %vm271_vm1, %v266_v6, %v620_v7  ;;  %v553_v16 = vld [vmem:[%s741_s3] ss:$0 sm:$0xff] }
  0x12   : > { %579 = vmatpush3.bf16.msra.mxu1 %v615_v2  ;;  %v288_v10 = vshrl.u32 %v274_v9, 16  ;;  %v290_v11 = vshll.u32 %v274_v9, 16 }
  0x13   : > { %580 = vmatprep.subr.bf16.mxu1 %v647_v1 }
  0x14   : > { %571 = vmatpush3.bf16.msra.mxu0 %v618_v4  ;;  %v292_v12 = vrot.slane %v290_v11, 1 }
  0x16   : > { %581 = vmatpush3.bf16.msra.mxu1 %v617_v5  ;;  %v293_v13 = vor.u32 %v292_v12, %v288_v10 }
  0x17   : > { %582 = vmatprep.subr.bf16.mxu1 %v647_v1 }
  0x18   : > { %573 = vmatmul.mubr.msk.bf16.vlgmr.msra.gmra.mxu0 %vm306_vm3, %v293_v13 }
  0x1a   : > { %583 = vmatpush3.bf16.msra.mxu1 %v619_v8 }
  0x1d   : > { %585 = vmatmul.mubr.msk.bf16.vlgmr.msra.gmra.mxu1 %vm374_vm2, %v274_v9 }
  0xd8   : > { %v344_v15 = vpop.f32.mrf.mxu0 }
  0xda   : > { %v574_v19 = vpop.f32.mrf.mxu0 }
  0xdc   : > { %v347_v22 = vpop.f32.mrf.mxu0 }
  0xdd   : > { %v411_v14 = vpop.f32.mrf.mxu1 }
  0xde   : > { %v412_v17 = vadd.f32 %v411_v14, %v344_v15  ;;  %v575_v25 = vpop.f32.mrf.mxu0 }
  0xdf   : > { %v586_v18 = vpop.f32.mrf.mxu1 }
  0xe0   : > { %v424_v20 = vadd.f32 %v553_v16, %v412_v17 }
  0xe1   : > { %v414_v21 = vpop.f32.mrf.mxu1 }
  0xe2   : > { %v426_v23 = vmul.f32 0.044715, %v424_v20  ;;  %v425_v31 = vmul.f32 0.5, %v424_v20 }
  0xe3   : > { %v587_v24 = vpop.f32.mrf.mxu1 }
  0xe4   : > { %v427_v26 = vmul.f32 %v426_v23, %v424_v20 }
  0xe6   : > { %v428_v27 = vmul.f32 %v427_v26, %v424_v20 }
  0xe8   : > { %v429_v28 = vadd.f32 %v428_v27, %v424_v20 }
  0xea   : > { %v430_v29 = vmul.f32 0.7978846, %v429_v28 }
  0xec   : > { %621 = vtanh.f32 %v430_v29 }
  0xf9   : > { %v622_v30 = vpop.eup %621 }
  0xfa   : > { %v432_v32 = vadd.f32 1.0, %v622_v30 }
  0xfc   : > { %v433_v33 = vmul.f32 %v432_v32, %v425_v31 }
  0xfe   : > { %434 = vst.msk [vmem:[%s264_s20] sm:$0xff] %vm306_vm3, %v433_v33 }
  0xff PF: > { %s14_s17 = sadd.s32 1, %s645_s17   ;;  %s743_s15 = smov %s641_s16 }
 0x100   : > { %p11_p5 = scmp.ge.s32.totalorder %s14_s17, 4   ;;  %s744_s16 = smov %s746_s18 }
 0x102   :  { %13 = sbr.rel (!%p11_p5) target bundleno = 2 (0x2), region = 70 }

</bundles_post_ra>
